<compile_context>
chip_gen: v7x
topology: tpu7x:2x2x1
jax: 0.10.0
libtpu: 0.0.40
codegen_flags: <defaults>
</compile_context>

<pallas_src>
import functools

import jax
import jax.numpy as jnp
from jax.experimental import pallas as pl
from jax.experimental.pallas import tpu as pltpu


def _round_up(x, m):
    return ((x + m - 1) // m) * m


def _ffn_kernel(x_ref, w1_ref, b1_ref, w2_ref, b2_ref, *rest, norm,
                matmul_dtype):
    if norm:
        gamma_ref, beta_ref, o_ref = rest
    else:
        (o_ref,) = rest

    x_f32 = x_ref[...].astype(jnp.float32)      # residual kept in f32
    x_mm = x_f32.astype(matmul_dtype)           # bf16 operands for the MXU

    # hidden = relu(x @ W1 + b1)   (bf16 matmul inputs, f32 accumulation)
    h = jnp.dot(x_mm, w1_ref[...], preferred_element_type=jnp.float32)
    h = jnp.maximum(h + b1_ref[...], 0.0)

    # out = hidden @ W2 + b2 + residual
    y = jnp.dot(h.astype(matmul_dtype), w2_ref[...],
                preferred_element_type=jnp.float32)
    y = y + b2_ref[...] + x_f32
    # TODO(synk): dropout is identity (inference); training mode would draw a
    #             Bernoulli mask with pltpu.prng_seed / prng_random_bits here.

    if norm:
        # LayerNorm over last axis (d_in), eps = 1e-6, elementwise affine.
        mean = jnp.mean(y, axis=-1, keepdims=True)
        yc = y - mean                            # centered value reused
        var = jnp.mean(yc * yc, axis=-1, keepdims=True)
        y = yc * jax.lax.rsqrt(var + 1e-6)
        y = y * gamma_ref[...] + beta_ref[...]

    o_ref[...] = y.astype(o_ref.dtype)


def positionwise_ffn(x, params, *, norm=False, block_rows=256,
                     matmul_dtype=jnp.bfloat16):
    """x: (batch, seq, d_in). Returns same shape/dtype."""
    batch, seq, d_in = x.shape
    d_hid = params["w1"].shape[1]
    if d_in % 128 or d_hid % 128:
        raise ValueError("d_in and d_hid must be multiples of 128 (lane width);"
                         " pad the model dims for lane-dense MXU tiles.")

    n = batch * seq
    x2d = x.reshape(n, d_in)

    # Sublane-aligned row tile (8 for f32, 16 for bf16, 32 for int8 inputs),
    # large enough to feed the 128/256-wide MXU and amortize the ~0.35us
    # per-grid-step overhead, but never larger than the (padded) row count.
    sublane = 8 * max(1, 4 // jnp.dtype(x.dtype).itemsize)
    block_rows = max(sublane, min(block_rows, _round_up(n, sublane)))
    block_rows = _round_up(block_rows, sublane)
    n_pad = _round_up(n, block_rows)
    if n_pad != n:
        x2d = jnp.pad(x2d, ((0, n_pad - n), (0, 0)))
    grid = (n_pad // block_rows,)

    # bf16 matmul operands: native MXU rate + half the weight DMA/VMEM bytes.
    w1 = params["w1"].astype(matmul_dtype)
    w2 = params["w2"].astype(matmul_dtype)
    b1 = params["b1"].astype(jnp.float32)
    b2 = params["b2"].astype(jnp.float32)

    const_shapes = [(d_in, d_hid), (1, d_hid), (d_hid, d_in), (1, d_in)]
    const_args = [w1, b1, w2, b2]
    if norm:
        const_shapes += [(1, d_in), (1, d_in)]
        const_args += [params["gamma"].astype(jnp.float32),
                       params["beta"].astype(jnp.float32)]

    row_spec = pl.BlockSpec((block_rows, d_in), lambda i: (i, 0))

    def const_spec(shape, single_buffer):
        if single_buffer:
            # Constant index_map -> fetched once; single-buffering halves the
            # VMEM cost of the resident weights with zero DMA penalty.
            return pl.BlockSpec(shape, lambda i: (0, 0),
                                pipeline_mode=pl.Buffered(buffer_count=1))
        return pl.BlockSpec(shape, lambda i: (0, 0))

    mm_bytes = jnp.dtype(matmul_dtype).itemsize
    io_bytes = jnp.dtype(x.dtype).itemsize
    cost = pl.CostEstimate(
        flops=4 * n_pad * d_in * d_hid,                  # two matmuls
        transcendentals=n_pad if norm else 0,            # rsqrt per row
        bytes_accessed=(2 * n_pad * d_in * io_bytes      # x in + out
                        + 2 * d_in * d_hid * mm_bytes    # W1 + W2
                        + (d_hid + 3 * d_in) * 4),       # b1, b2, gamma, beta
    )

    kernel = functools.partial(_ffn_kernel, norm=norm,
                               matmul_dtype=matmul_dtype)

    def _run(single_buffer_weights):
        in_specs = ([row_spec] +
                    [const_spec(s, single_buffer_weights)
                     for s in const_shapes])
        return pl.pallas_call(
            kernel,
            out_shape=jax.ShapeDtypeStruct((n_pad, d_in), x.dtype),
            grid_spec=pltpu.PrefetchScalarGridSpec(
                num_scalar_prefetch=0,
                grid=grid,
                in_specs=in_specs,
                out_specs=row_spec,
            ),
            compiler_params=pltpu.CompilerParams(
                dimension_semantics=("parallel",),       # megacore-shard rows
                vmem_limit_bytes=64 * 1024 * 1024,       # above scoped default,
            ),                                           # within physical VMEM
            cost_estimate=cost,
        )(x2d, *const_args)

    try:
        out2d = _run(True)
    except Exception:
        # Fallback for jax builds without BlockSpec(pipeline_mode=...):
        # default double-buffering of the (small, resident) weights.
        out2d = _run(False)

    return out2d[:n].reshape(batch, seq, d_in)


def init_params(key, d_in, d_hid, dtype=jnp.float32):
    k1, k2, k3, k4 = jax.random.split(key, 4)
    # PyTorch nn.Linear default: U(-1/sqrt(fan_in), 1/sqrt(fan_in))
    lim1 = 1.0 / (d_in ** 0.5)
    lim2 = 1.0 / (d_hid ** 0.5)
    return {
        "w1": jax.random.uniform(k1, (d_in, d_hid), dtype, -lim1, lim1),
        "b1": jax.random.uniform(k2, (1, d_hid), dtype, -lim1, lim1),
        "w2": jax.random.uniform(k3, (d_hid, d_in), dtype, -lim2, lim2),
        "b2": jax.random.uniform(k4, (1, d_in), dtype, -lim2, lim2),
        "gamma": jnp.ones((1, d_in), dtype),
        "beta": jnp.zeros((1, d_in), dtype),
    }


def _reference(x, params, norm, matmul_dtype=jnp.bfloat16):
    # Mirrors the kernel's datapath: bf16 matmul operands, f32 accumulation,
    # f32 residual + LayerNorm.
    xm = x.astype(matmul_dtype)
    w1 = params["w1"].astype(matmul_dtype)
    w2 = params["w2"].astype(matmul_dtype)
    h = jnp.dot(xm, w1, preferred_element_type=jnp.float32) + params["b1"][0]
    h = jnp.maximum(h, 0.0)
    y = jnp.dot(h.astype(matmul_dtype), w2,
                preferred_element_type=jnp.float32) + params["b2"][0]
    y = y + x.astype(jnp.float32)
    if norm:
        mean = jnp.mean(y, axis=-1, keepdims=True)
        yc = y - mean
        var = jnp.mean(yc * yc, axis=-1, keepdims=True)
        y = yc * jax.lax.rsqrt(var + 1e-6)
        y = y * params["gamma"][0] + params["beta"][0]
    return y.astype(x.dtype)


if __name__ == "__main__":
    # Lane-aligned small shapes: d_in/d_hid multiples of 128, and enough rows
    # (batch*seq = 512) that the default 256-row tile yields a grid of 2
    # (keeps both v7x TensorCores busy).
    batch, seq, d_in, d_hid = 2, 256, 128, 256
    key = jax.random.PRNGKey(0)
    kx, kp = jax.random.split(key)
    x = jax.random.normal(kx, (batch, seq, d_in), jnp.float32)
    params = init_params(kp, d_in, d_hid)

    ok = True
    for norm in (False, True):
        out = jax.block_until_ready(positionwise_ffn(x, params, norm=norm))
        ref = _reference(x, params, norm)
        err = float(jnp.max(jnp.abs(out.astype(jnp.float32)
                                    - ref.astype(jnp.float32))))
        if err > 5e-3:
            ok = False
            print(f"MISMATCH (norm={norm}): max abs err {err}")

    if ok:
        print("KERNEL_OK")
</pallas_src>

<mosaic_0001>
module attributes {stable_mosaic.version = 11 : i64} {
  func.func @_ffn_kernel(%arg0: i32, %arg1: memref<256x128xf32, #tpu.memory_space<vmem>>, %arg2: memref<128x256xbf16, #tpu.memory_space<vmem>>, %arg3: memref<1x256xf32, #tpu.memory_space<vmem>>, %arg4: memref<256x128xbf16, #tpu.memory_space<vmem>>, %arg5: memref<1x128xf32, #tpu.memory_space<vmem>>, %arg6: memref<256x128xf32, #tpu.memory_space<vmem>>) attributes {dimension_semantics = [#tpu.dimension_semantics<parallel>], iteration_bounds = array<i64: 2>, scalar_prefetch = 0 : i64, scratch_operands = 0 : i64, tpu.core_type = #tpu.core_type<tc>, window_params = [{transform_indices = @transform_0, window_bounds = array<i64: 256, 128>}, {pipeline_mode = #tpu.pipeline_mode<synchronous>, transform_indices = @transform_1, window_bounds = array<i64: 128, 256>}, {pipeline_mode = #tpu.pipeline_mode<synchronous>, transform_indices = @transform_2, window_bounds = array<i64: 1, 256>}, {pipeline_mode = #tpu.pipeline_mode<synchronous>, transform_indices = @transform_3, window_bounds = array<i64: 256, 128>}, {pipeline_mode = #tpu.pipeline_mode<synchronous>, transform_indices = @transform_4, window_bounds = array<i64: 1, 128>}, {transform_indices = @transform_5, window_bounds = array<i64: 256, 128>}]} {
    %c0 = arith.constant 0 : index
    %c0_0 = arith.constant 0 : index
    %0 = vector.load %arg1[%c0, %c0_0] : memref<256x128xf32, #tpu.memory_space<vmem>>, vector<256x128xf32>
    %1 = arith.truncf %0 : vector<256x128xf32> to vector<256x128xbf16>
    %c0_1 = arith.constant 0 : index
    %c0_2 = arith.constant 0 : index
    %2 = vector.load %arg2[%c0_1, %c0_2] : memref<128x256xbf16, #tpu.memory_space<vmem>>, vector<128x256xbf16>
    %cst = arith.constant dense<0.000000e+00> : vector<256x256xf32>
    %3 = tpu.matmul %1, %2, %cst {dimension_numbers = #tpu.dot_dimension_numbers<[1], [0], [0], [1], [0, 0, 1, 1], [], []>} : vector<256x128xbf16>, vector<128x256xbf16>, vector<256x256xf32> -> vector<256x256xf32>
    %c0_3 = arith.constant 0 : index
    %c0_4 = arith.constant 0 : index
    %4 = vector.load %arg3[%c0_3, %c0_4] : memref<1x256xf32, #tpu.memory_space<vmem>>, vector<1x256xf32>
    %5 = vector.broadcast %4 : vector<1x256xf32> to vector<256x256xf32>
    %6 = arith.addf %3, %5 : vector<256x256xf32>
    %cst_5 = arith.constant 0.000000e+00 : f32
    %7 = vector.broadcast %cst_5 : f32 to vector<256x256xf32>
    %8 = arith.maximumf %6, %7 : vector<256x256xf32>
    %9 = arith.truncf %8 : vector<256x256xf32> to vector<256x256xbf16>
    %c0_6 = arith.constant 0 : index
    %c0_7 = arith.constant 0 : index
    %10 = vector.load %arg4[%c0_6, %c0_7] : memref<256x128xbf16, #tpu.memory_space<vmem>>, vector<256x128xbf16>
    %cst_8 = arith.constant dense<0.000000e+00> : vector<256x128xf32>
    %11 = tpu.matmul %9, %10, %cst_8 {dimension_numbers = #tpu.dot_dimension_numbers<[1], [0], [0], [1], [0, 0, 1, 1], [], []>} : vector<256x256xbf16>, vector<256x128xbf16>, vector<256x128xf32> -> vector<256x128xf32>
    %c0_9 = arith.constant 0 : index
    %c0_10 = arith.constant 0 : index
    %12 = vector.load %arg5[%c0_9, %c0_10] : memref<1x128xf32, #tpu.memory_space<vmem>>, vector<1x128xf32>
    %13 = vector.broadcast %12 : vector<1x128xf32> to vector<256x128xf32>
    %14 = arith.addf %11, %13 : vector<256x128xf32>
    %15 = arith.addf %14, %0 : vector<256x128xf32>
    %c0_11 = arith.constant 0 : index
    %c0_12 = arith.constant 0 : index
    %16 = vector.load %arg6[%c0_11, %c0_12] : memref<256x128xf32, #tpu.memory_space<vmem>>, vector<256x128xf32>
    tpu.vector_store %arg6[%c0_11, %c0_12], %15 {strides = array<i32>} : memref<256x128xf32, #tpu.memory_space<vmem>>, vector<256x128xf32>,
    return
  }
  func.func @transform_0(%arg0: i32) -> (i32, i32) {
    %c0_i32 = arith.constant 0 : i32
    %c0_i32_0 = arith.constant 0 : i32
    return %arg0, %c0_i32 : i32, i32
  }
  func.func @transform_1(%arg0: i32) -> (i32, i32) {
    %c0_i32 = arith.constant 0 : i32
    %c0_i32_0 = arith.constant 0 : i32
    %c0_i32_1 = arith.constant 0 : i32
    return %c0_i32, %c0_i32_0 : i32, i32
  }
  func.func @transform_2(%arg0: i32) -> (i32, i32) {
    %c0_i32 = arith.constant 0 : i32
    %c0_i32_0 = arith.constant 0 : i32
    %c0_i32_1 = arith.constant 0 : i32
    return %c0_i32, %c0_i32_0 : i32, i32
  }
  func.func @transform_3(%arg0: i32) -> (i32, i32) {
    %c0_i32 = arith.constant 0 : i32
    %c0_i32_0 = arith.constant 0 : i32
    %c0_i32_1 = arith.constant 0 : i32
    return %c0_i32, %c0_i32_0 : i32, i32
  }
  func.func @transform_4(%arg0: i32) -> (i32, i32) {
    %c0_i32 = arith.constant 0 : i32
    %c0_i32_0 = arith.constant 0 : i32
    %c0_i32_1 = arith.constant 0 : i32
    return %c0_i32, %c0_i32_0 : i32, i32
  }
  func.func @transform_5(%arg0: i32) -> (i32, i32) {
    %c0_i32 = arith.constant 0 : i32
    %c0_i32_0 = arith.constant 0 : i32
    return %arg0, %c0_i32 : i32, i32
  }
}

module attributes {stable_mosaic.version = 11 : i64} {
  func.func @_ffn_kernel(%arg0: i32, %arg1: memref<256x128xf32, #tpu.memory_space<vmem>>, %arg2: memref<128x256xbf16, #tpu.memory_space<vmem>>, %arg3: memref<1x256xf32, #tpu.memory_space<vmem>>, %arg4: memref<256x128xbf16, #tpu.memory_space<vmem>>, %arg5: memref<1x128xf32, #tpu.memory_space<vmem>>, %arg6: memref<256x128xf32, #tpu.memory_space<vmem>>) attributes {dimension_semantics = [#tpu.dimension_semantics<parallel>], iteration_bounds = array<i64: 2>, scalar_prefetch = 0 : i64, scratch_operands = 0 : i64, tpu.core_type = #tpu.core_type<tc>, window_params = [{transform_indices = @transform_0, window_bounds = array<i64: 256, 128>}, {pipeline_mode = #tpu.pipeline_mode<synchronous>, transform_indices = @transform_1, window_bounds = array<i64: 128, 256>}, {pipeline_mode = #tpu.pipeline_mode<synchronous>, transform_indices = @transform_2, window_bounds = array<i64: 1, 256>}, {pipeline_mode = #tpu.pipeline_mode<synchronous>, transform_indices = @transform_3, window_bounds = array<i64: 256, 128>}, {pipeline_mode = #tpu.pipeline_mode<synchronous>, transform_indices = @transform_4, window_bounds = array<i64: 1, 128>}, {transform_indices = @transform_5, window_bounds = array<i64: 256, 128>}]} {
    %c0 = arith.constant 0 : index
    %c0_0 = arith.constant 0 : index
    %0 = vector.load %arg1[%c0, %c0_0] : memref<256x128xf32, #tpu.memory_space<vmem>>, vector<256x128xf32>
    %1 = arith.truncf %0 : vector<256x128xf32> to vector<256x128xbf16>
    %c0_1 = arith.constant 0 : index
    %c0_2 = arith.constant 0 : index
    %2 = vector.load %arg2[%c0_1, %c0_2] : memref<128x256xbf16, #tpu.memory_space<vmem>>, vector<128x256xbf16>
    %cst = arith.constant dense<0.000000e+00> : vector<256x256xf32>
    %3 = tpu.matmul %1, %2, %cst {dimension_numbers = #tpu.dot_dimension_numbers<[1], [0], [0], [1], [0, 0, 1, 1], [], []>} : vector<256x128xbf16>, vector<128x256xbf16>, vector<256x256xf32> -> vector<256x256xf32>
    %c0_3 = arith.constant 0 : index
    %c0_4 = arith.constant 0 : index
    %4 = vector.load %arg3[%c0_3, %c0_4] : memref<1x256xf32, #tpu.memory_space<vmem>>, vector<1x256xf32>
    %5 = vector.broadcast %4 : vector<1x256xf32> to vector<256x256xf32>
    %6 = arith.addf %3, %5 : vector<256x256xf32>
    %cst_5 = arith.constant 0.000000e+00 : f32
    %7 = vector.broadcast %cst_5 : f32 to vector<256x256xf32>
    %8 = arith.maximumf %6, %7 : vector<256x256xf32>
    %9 = arith.truncf %8 : vector<256x256xf32> to vector<256x256xbf16>
    %c0_6 = arith.constant 0 : index
    %c0_7 = arith.constant 0 : index
    %10 = vector.load %arg4[%c0_6, %c0_7] : memref<256x128xbf16, #tpu.memory_space<vmem>>, vector<256x128xbf16>
    %cst_8 = arith.constant dense<0.000000e+00> : vector<256x128xf32>
    %11 = tpu.matmul %9, %10, %cst_8 {dimension_numbers = #tpu.dot_dimension_numbers<[1], [0], [0], [1], [0, 0, 1, 1], [], []>} : vector<256x256xbf16>, vector<256x128xbf16>, vector<256x128xf32> -> vector<256x128xf32>
    %c0_9 = arith.constant 0 : index
    %c0_10 = arith.constant 0 : index
    %12 = vector.load %arg5[%c0_9, %c0_10] : memref<1x128xf32, #tpu.memory_space<vmem>>, vector<1x128xf32>
    %13 = vector.broadcast %12 : vector<1x128xf32> to vector<256x128xf32>
    %14 = arith.addf %11, %13 : vector<256x128xf32>
    %15 = arith.addf %14, %0 : vector<256x128xf32>
    %c0_11 = arith.constant 0 : index
    %c0_12 = arith.constant 0 : index
    %16 = vector.load %arg6[%c0_11, %c0_12] : memref<256x128xf32, #tpu.memory_space<vmem>>, vector<256x128xf32>
    tpu.vector_store %arg6[%c0_11, %c0_12], %15 {strides = array<i32>} : memref<256x128xf32, #tpu.memory_space<vmem>>, vector<256x128xf32>,
    return
  }
  func.func @transform_0(%arg0: i32) -> (i32, i32) {
    %c0_i32 = arith.constant 0 : i32
    %c0_i32_0 = arith.constant 0 : i32
    return %arg0, %c0_i32 : i32, i32
  }
  func.func @transform_1(%arg0: i32) -> (i32, i32) {
    %c0_i32 = arith.constant 0 : i32
    %c0_i32_0 = arith.constant 0 : i32
    %c0_i32_1 = arith.constant 0 : i32
    return %c0_i32, %c0_i32_0 : i32, i32
  }
  func.func @transform_2(%arg0: i32) -> (i32, i32) {
    %c0_i32 = arith.constant 0 : i32
    %c0_i32_0 = arith.constant 0 : i32
    %c0_i32_1 = arith.constant 0 : i32
    return %c0_i32, %c0_i32_0 : i32, i32
  }
  func.func @transform_3(%arg0: i32) -> (i32, i32) {
    %c0_i32 = arith.constant 0 : i32
    %c0_i32_0 = arith.constant 0 : i32
    %c0_i32_1 = arith.constant 0 : i32
    return %c0_i32, %c0_i32_0 : i32, i32
  }
  func.func @transform_4(%arg0: i32) -> (i32, i32) {
    %c0_i32 = arith.constant 0 : i32
    %c0_i32_0 = arith.constant 0 : i32
    %c0_i32_1 = arith.constant 0 : i32
    return %c0_i32, %c0_i32_0 : i32, i32
  }
  func.func @transform_5(%arg0: i32) -> (i32, i32) {
    %c0_i32 = arith.constant 0 : i32
    %c0_i32_0 = arith.constant 0 : i32
    return %arg0, %c0_i32 : i32, i32
  }
}

</mosaic_0001>

<bundles_post_ra>
// kernel: tpu_custom_call.1
= control target key start
LH: loop header
LB: loop body
LE: loop exit
PB: predicated region body
PF: predicated region fallthrough
CT: control target
= control target key end

     0   :  { %10 = vsyncpa [#allocation3], 0  ;;  %s2401_s0 = inlined_call_operand.hbm [shape: f32[512,128], index: 0, kind: input, shape index: {}]   ;;  %s2402_s1 = inlined_call_operand.hbm [shape: bf16[128,256], index: 1, kind: input, shape index: {}]   ;;  %s2403_s2 = inlined_call_operand.hbm [shape: f32[1,256], index: 2, kind: input, shape index: {}]   ;;  %s2404_s3 = inlined_call_operand.hbm [shape: bf16[256,128], index: 3, kind: input, shape index: {}]   ;;  %s2405_s4 = inlined_call_operand.hbm [shape: f32[1,128], index: 4, kind: input, shape index: {}]   ;;  %s2406_s5 = inlined_call_operand.hbm [shape: f32[512,128], index: 5, kind: output, shape index: {}]  }
   0x1   :  { %12 = vsyncpa [#allocation3 + $0x1], 0 }
   0x2   :  { %13 = vsyncpa [#allocation6], 0 }
   0x3   :  { %14 = vsyncpa [#allocation9], 0 }
   0x4   :  { %15 = vsyncpa [#allocation4], 0 }
   0x5   :  { %17 = vsyncpa [#allocation4 + $0x1], 0  ;;  %s1794_s18 = smov 0   ;;  %s1796_s19 = smov 0  }
   0x6   :  { %s1798_s20 = smov 0   ;;  %s1800_s21 = smov 0  }
   0x7 LB: > { %s1815_s22 = sadd.s32 4294967295, %s1749_s21   ;;  %s1230_s23 = sadd.s32 4294967294, %s1749_s21   ;;  %s1749_s21 = sphi %s1800_s21, %s2431_s21   ;;  %s1745_s20 = sphi %s1798_s20, %s2430_s20   ;;  %s1741_s19 = sphi %s1796_s19, %s2429_s19   ;;  %s1737_s18 = sphi %s1794_s18, %s2428_s18  }
   0x8   : > { %p43_p0 = scmp.ne.s32.totalorder %s1741_s19, %s1737_s18  ;;  %p2407_p1 = scmp.eq.s32.totalorder %s1815_s22, 0 }
   0x9   : > { %p157_p3 = scmp.eq.s32.totalorder %s1230_s23, 1  ;;  %p1231_p5 = scmp.ge.s32.totalorder %s1749_s21, 1 }
   0xa   : > { %p1824_p4 = por %p2407_p1, %p43_p0  ;;  %p164_p7 = scmp.lt.s32.totalorder %s1749_s21, 3 }
   0xb   : > { %p1829_p6 = por %p157_p3, %p43_p0  ;;  %s1751_s27 = smov [#allocation5]  }
   0xc   : > { %s2411_s24 = scalar_select %p1824_p4, 1, 0 }
   0xd   : > { %s2412_s25 = scalar_select %p1829_p6, 1, 0 }
   0xe   : > { %p1834_p8 = pnand %p1231_p5, %p164_p7  ;;  %s176_s28 = sshll.u32 %s1751_s27, 4  ;;  %s1838_s28 = int_to_ptr.vmem [resolvable:$true] %s176_s28 }
   0xf   : > { %s1752_s30 = smov [#allocation8]   ;;  %s1533_s9 = scalar_lea.hbm %s2402_s1, 2048 }
  0x10   : > { %s2413_s26 = scalar_select %p1834_p8, 1, 0 }
  0x11   : > { %p1419_p9 = pneg %p1834_p8  ;;  %s200_s6 = sshll.u32 %s1752_s30, 4  ;;  %s1849_s6 = int_to_ptr.vmem [resolvable:$true] %s200_s6 }
  0x12   : > { %p1534_p12 = scmp.ne.s32.totalorder %s2402_s1, %s1533_s9  ;;  %p1540_p5 = scmp.lt.u32.totalorder %s1533_s9, %s2402_s1 }
  0x13   : > { %p1845_p11 = pnand %p1419_p9, %p2407_p1 }
  0x15   : > { %p1859_p13 = pneg %p1845_p11 }
  0x17   : > { %p1536_p0 = pnand %p1859_p13, %p1534_p12 }
  0x19   : > { %p1537_p3 = pneg %p1536_p0 }
  0x1b   : > { %p1542_p7 = pnand %p1540_p5, %p1537_p3 }
  0x1d   : > { %1545 = shalt.err (!%p1542_p7)
}
  0x1e   : > { %s1546_s15 = scalar_lea.vmem %s1838_s28, 2048  ;;  %p1554_p2 = scmp.lt.s32.totalorder %s1838_s28, %s1838_s28 }
  0x1f   : > { %p1547_p9 = scmp.ne.s32.totalorder %s1838_s28, %s1546_s15  ;;  %p1555_p6 = scmp.lt.s32.totalorder %s1546_s15, %s1546_s15 }
  0x21   : > { %p1549_p10 = pnand %p1547_p9, %p1859_p13  ;;  %p1556_p12 = por %p1555_p6, %p1554_p2 }
  0x23   : > { %p1550_p1 = pneg %p1549_p10 }
  0x25   : > { %p1557_p0 = pnand %p1556_p12, %p1550_p1 }
  0x27   : > { %1560 = shalt.err (!%p1557_p0)
}
  0x28   : > { %s2408_s16 = smov 128   ;;  %s1754_s17 = smov 8  }
  0x29   : > { %1422 = dma.hbm_to_vmem [thread:$0]  (!%p1845_p11), %s2402_s1, 2048, %s1838_s28, [#allocation6], %s2408_s16, %s2408_s16, %s1754_s17  }
  0x2a   : > { %s1561_s8 = scalar_lea.hbm %s2404_s3, 2048 }
  0x2b   : > { %p1562_p1 = scmp.ne.s32.totalorder %s2404_s3, %s1561_s8  ;;  %p1568_p10 = scmp.lt.u32.totalorder %s1561_s8, %s2404_s3 }
  0x2d   : > { %p1564_p2 = pnand %p1562_p1, %p1859_p13 }
  0x2f   : > { %p1565_p6 = pneg %p1564_p2 }
  0x31   : > { %p1570_p3 = pnand %p1568_p10, %p1565_p6 }
  0x33   : > { %1573 = shalt.err (!%p1570_p3)
}
  0x34   : > { %s1574_s28 = scalar_lea.vmem %s1849_s6, 2048  ;;  %p1582_p12 = scmp.lt.s32.totalorder %s1849_s6, %s1849_s6 }
  0x35   : > { %p1575_p5 = scmp.ne.s32.totalorder %s1849_s6, %s1574_s28  ;;  %p1583_p0 = scmp.lt.s32.totalorder %s1574_s28, %s1574_s28 }
  0x37   : > { %p1577_p7 = pnand %p1575_p5, %p1859_p13  ;;  %p1584_p1 = por %p1583_p0, %p1582_p12 }
  0x39   : > { %p1578_p9 = pneg %p1577_p7 }
  0x3b   : > { %p1585_p2 = pnand %p1584_p1, %p1578_p9 }
  0x3d   : > { %1588 = shalt.err (!%p1585_p2)
}
  0x3e   : > { %s1755_s14 = smov 64   ;;  %s1756_s15 = smov 4  }
  0x3f   : > { %1428 = dma.hbm_to_vmem [thread:$0]  (!%p1845_p11), %s2404_s3, 2048, %s1849_s6, [#allocation9], %s1755_s14, %s1755_s14, %s1756_s15  }
  0x40   : > { %s1757_s30 = smov [#allocation7]   ;;  %s1758_s8 = smov [#allocation10]  }
  0x41   : > { %s190_s7 = sshll.u32 %s1757_s30, 4  ;;  %s214_s9 = sshll.u32 %s1758_s8, 4  ;;  %s191_s7 = int_to_ptr.vmem [resolvable:$true] %s190_s7  ;;  %s1906_s9 = int_to_ptr.vmem [resolvable:$true] %s214_s9 }
  0x42   : > { %s1589_s13 = scalar_lea.hbm %s2403_s2, 32 }
  0x43   : > { %p1590_p6 = scmp.ne.s32.totalorder %s2403_s2, %s1589_s13  ;;  %p1596_p5 = scmp.lt.u32.totalorder %s1589_s13, %s2403_s2 }
  0x45   : > { %p1592_p10 = pnand %p1590_p6, %p1859_p13 }
  0x47   : > { %p1593_p3 = pneg %p1592_p10 }
  0x49   : > { %p1598_p7 = pnand %p1596_p5, %p1593_p3 }
  0x4b   : > { %1601 = shalt.err (!%p1598_p7)
}
  0x4c   : > { %s1602_s14 = scalar_lea.vmem %s191_s7, 32  ;;  %p1610_p1 = scmp.lt.s32.totalorder %s191_s7, %s191_s7 }
  0x4d   : > { %p1603_p9 = scmp.ne.s32.totalorder %s191_s7, %s1602_s14  ;;  %p1611_p2 = scmp.lt.s32.totalorder %s1602_s14, %s1602_s14 }
  0x4f   : > { %p1605_p12 = pnand %p1603_p9, %p1859_p13  ;;  %p1612_p4 = por %p1611_p2, %p1610_p1 }
  0x51   : > { %p1606_p0 = pneg %p1605_p12 }
  0x53   : > { %p1613_p8 = pnand %p1612_p4, %p1606_p0 }
  0x55   : > { %1616 = shalt.err (!%p1613_p8)
}
  0x56   : > { %1425 = dma.hbm_to_vmem [thread:$0]  (!%p1845_p11), %s2403_s2, 32, %s191_s7, [#allocation6]  }
  0x57   : > { %s1617_s8 = scalar_lea.hbm %s2405_s4, 16 }
  0x58   : > { %p1618_p6 = scmp.ne.s32.totalorder %s2405_s4, %s1617_s8  ;;  %p1624_p4 = scmp.lt.u32.totalorder %s1617_s8, %s2405_s4 }
  0x5a   : > { %p1620_p10 = pnand %p1618_p6, %p1859_p13 }
  0x5c   : > { %p1621_p3 = pneg %p1620_p10 }
  0x5e   : > { %p1626_p8 = pnand %p1624_p4, %p1621_p3 }
  0x60   : > { %1629 = shalt.err (!%p1626_p8)
}
  0x61   : > { %s1630_s7 = scalar_lea.vmem %s1906_s9, 16  ;;  %s1637_s23 = scalar_lea.vmem %s1906_s9, 32 }
  0x62   : > { %p1631_p5 = scmp.ne.s32.totalorder %s1906_s9, %s1630_s7  ;;  %p1638_p12 = scmp.lt.s32.totalorder %s1906_s9, %s1906_s9 }
  0x63   : > { %p1639_p0 = scmp.lt.s32.totalorder %s1637_s23, %s1630_s7 }
  0x64   : > { %p1633_p7 = pnand %p1631_p5, %p1859_p13 }
  0x65   : > { %p1640_p1 = por %p1639_p0, %p1638_p12 }
  0x66   : > { %p1634_p9 = pneg %p1633_p7 }
  0x68   : > { %p1641_p2 = pnand %p1640_p1, %p1634_p9 }
  0x6a   : > { %1644 = shalt.err (!%p1641_p2)
}
  0x6b   : > { %1431 = dma.hbm_to_vmem [thread:$0]  (!%p1845_p11), %s2405_s4, 16, %s1906_s9, [#allocation9]  }
  0x6c   : > { %s1951_s12 = sadd.s32 1, %s1749_s21   ;;  %s30_s16 = sadd.s32 1, %s1745_s20 }
  0x6d   : > { %s27_s29 = ssub.s32 %s1749_s21, %s1951_s12  ;;  %p37_p6 = scmp.ne.s32.totalorder %s1745_s20, %s1741_s19 }
  0x6e   : > { %p28_p13 = scmp.eq.s32.totalorder %s27_s29, 0  ;;  %p38_p10 = scmp.eq.s32.totalorder %s1749_s21, 0 }
  0x6f   : > { %p2416_p4 = scmp.eq.s32.totalorder %s1815_s22, 1  ;;  %p1444_p5 = scmp.lt.s32.totalorder %s1749_s21, 2 }
  0x70   : > { %s1960_s15 = scalar_select %p28_p13, %s1745_s20, %s30_s16  }
  0x71   : > { %p39_p3 = por %p38_p10, %p37_p6  ;;  %p1964_p8 = por %p2416_p4, %p37_p6 }
  0x72   : > { %s225_s30 = sand.u32 1, %s1745_s20   ;;  %s1285_s9 = sshll.u32 %s1749_s21, 12 }
  0x73   : > { %s1237_s8 = sshll.u32 %s225_s30, 8  ;;  %s1974_s13 = scalar_lea.hbm %s2401_s0, %s1285_s9 }
  0x74   : > { %s229_s28 = scalar_lea.vmem [#allocation2], %s1237_s8  ;;  %p1978_p11 = pnand %p1444_p5, %p39_p3 }
  0x75   : > { %s236_s7 = sshll.u32 %s229_s28, 4  ;;  %s1982_s6 = scalar_lea.sflag [#allocation3], %s225_s30  ;;  %s1976_s7 = int_to_ptr.vmem [resolvable:$true] %s236_s7 }
  0x76   : > { %s1645_s14 = scalar_lea.hbm %s1974_s13, 4096  ;;  %p1647_p9 = pneg %p1978_p11 }
  0x77   : > { %p1646_p7 = scmp.ne.s32.totalorder %s1974_s13, %s1645_s14  ;;  %s1650_s8 = scalar_lea.hbm %s2401_s0, 8192 }
  0x78   : > { %p1651_p1 = scmp.lt.u32.totalorder %s1974_s13, %s2401_s0  ;;  %p1652_p2 = scmp.lt.u32.totalorder %s1650_s8, %s1645_s14 }
  0x79   : > { %p1648_p12 = pnand %p1647_p9, %p1646_p7  ;;  %p1654_p6 = scmp.lt.u32.totalorder %s1645_s14, %s1974_s13 }
  0x7a   : > { %p1653_p13 = por %p1652_p2, %p1651_p1 }
  0x7b   : > { %p1649_p0 = pneg %p1648_p12 }
  0x7c   : > { %p1655_p10 = por %p1654_p6, %p1653_p13 }
  0x7e   : > { %p1656_p3 = pnand %p1655_p10, %p1649_p0 }
  0x80   : > { %1659 = shalt.err (!%p1656_p3)
}
  0x81   : > { %s1660_s30 = scalar_lea.vmem %s1976_s7, 4096  ;;  %s1759_s11 = smov [#allocation2]  }
  0x82   : > { %p1661_p4 = scmp.ne.s32.totalorder %s1976_s7, %s1660_s30  ;;  %s1665_s28 = sshll.u32 %s1759_s11, 4  ;;  %s1666_s28 = int_to_ptr.vmem [resolvable:$false] %s1665_s28 }
  0x83   : > { %s1667_s29 = scalar_lea.vmem %s1666_s28, 8192  ;;  %p1668_p12 = scmp.lt.s32.totalorder %s1976_s7, %s1666_s28 }
  0x84   : > { %p1663_p5 = pnand %p1661_p4, %p1647_p9  ;;  %p1669_p1 = scmp.lt.s32.totalorder %s1667_s29, %s1660_s30 }
  0x86   : > { %p1664_p7 = pneg %p1663_p5  ;;  %p1670_p2 = por %p1669_p1, %p1668_p12 }
  0x88   : > { %p1671_p13 = pnand %p1670_p2, %p1664_p7 }
  0x8a   : > { %1674 = shalt.err (!%p1671_p13)
}
  0x8b   : > { %s2419_s14 = smov 128   ;;  %p2420_p9 = scmp.ne.s32.totalorder %s2413_s26, 0 }
  0x8c   : > { %1435 = dma.hbm_to_vmem [thread:$0]  (!%p1978_p11), %s1974_s13, 4096, %s1976_s7, %s1982_s6, %s2419_s14, %s2419_s14, %s1754_s17  }
  0x8d   : > { %248 = sbr.rel (%p2420_p9) target bundleno = 767 (0x2ff), region = 40  ;;  %s2016_s16 = sand.u32 (!%p2420_p9), 1, %s1741_s19  }
  0x8e   : > { %s1241_s8 = sshll.u32 (!%p2420_p9), %s2016_s16, 8  ;;  %s251_s9 = scalar_lea.sflag (!%p2420_p9), [#allocation3], %s2016_s16 }
  0x8f   : > { %s2022_s23 = scalar_lea.vmem (!%p2420_p9), [#allocation2], %s1241_s8  ;;  %p2421_p0 = scmp.ne.s32.totalorder (!%p2420_p9), %s2411_s24, 0 }
  0x94   : > { %1720 = dma.done.wait (%p2421_p0), %s251_s9, 4096  }
  0x95   : > { %1722 = vsyncadd (%p2421_p0), %s251_s9, 4294963200  ;;  %p2422_p11 = scmp.eq.s32.totalorder %s1815_s22, 0 }
  0x97   : > { %1724 = dma.done.wait (%p2422_p11), [#allocation6], 2080   ;;  %p2423_p6 = pmov %p2422_p11 }
  0x99   : > { %1726 = vsyncadd (%p2423_p6), [#allocation6], 4294965216  ;;  %p2424_p10 = pmov %p2423_p6 }
  0x9a   : > { %p2425_p3 = pmov %p2423_p6 }
  0x9b   : > { %1728 = dma.done.wait (%p2424_p10), [#allocation9], 2064  }
  0x9c   : > { %1730 = vsyncadd (%p2425_p3), [#allocation9], 4294965232  ;;  %v1760_v0 = vmov 0   ;;  %v1493_v1 = vld [vmem:[#allocation5 + $0x4] ss:$8 sps:$4 sm:$0xff]   ;;  %v1521_v24 = vld [vmem:[#allocation8 + $0x50] sm:$0xff]  }
  0x9d   : > { %488 = vmatprep.mubr.bf16.mxu0 %v1760_v0  ;;  %v1495_v2 = vld [vmem:[#allocation5] ss:$8 sps:$4 sm:$0xff]   ;;  %456 = vmatprep.subr.bf16.mxu0 %v1493_v1  ;;  %v1496_v3 = vld [vmem:[#allocation5 + $0x14] ss:$8 sps:$4 sm:$0xff]   ;;  %v1498_v4 = vld [vmem:[#allocation5 + $0x10] ss:$8 sps:$4 sm:$0xff]  }
  0x9e   : > { %457 = vmatpush1.bf16.msra.mxu0 %v1495_v2  ;;  %v1499_v5 = vld [vmem:[#allocation5 + $0x24] ss:$8 sps:$4 sm:$0xff]   ;;  %v1501_v6 = vld [vmem:[#allocation5 + $0x20] ss:$8 sps:$4 sm:$0xff]   ;;  %v1502_v7 = vld [vmem:[#allocation5 + $0x34] ss:$8 sps:$4 sm:$0xff]  }
  0x9f   : > { %458 = vmatprep.subr.bf16.mxu0 %v1496_v3  ;;  %v1504_v8 = vld [vmem:[#allocation5 + $0x30] ss:$8 sps:$4 sm:$0xff]   ;;  %v1505_v9 = vld [vmem:[#allocation5 + $0x44] ss:$8 sps:$4 sm:$0xff]   ;;  %v1507_v10 = vld [vmem:[#allocation5 + $0x40] ss:$8 sps:$4 sm:$0xff]  }
  0xa0   : > { %v1508_v11 = vld [vmem:[#allocation5 + $0x54] ss:$8 sps:$4 sm:$0xff]   ;;  %v1510_v12 = vld [vmem:[#allocation5 + $0x50] ss:$8 sps:$4 sm:$0xff]   ;;  %v1511_v13 = vld [vmem:[#allocation5 + $0x64] ss:$8 sps:$4 sm:$0xff]  }
  0xa1   : > { %v1513_v14 = vld [vmem:[#allocation5 + $0x60] ss:$8 sps:$4 sm:$0xff]   ;;  %v1514_v15 = vld [vmem:[#allocation5 + $0x74] ss:$8 sps:$4 sm:$0xff]   ;;  %v1516_v19 = vld [vmem:[#allocation5 + $0x70] ss:$8 sps:$4 sm:$0xff]  }
  0xa2   : > { %459 = vmatpush1.bf16.msra.mxu0 %v1498_v4  ;;  %v1517_v16 = vld [vmem:[#allocation8 + $0x40] sm:$0xff]   ;;  %v1519_v18 = vld [vmem:[#allocation8 + $0x48] sm:$0xff]   ;;  %v1522_v25 = vld [vmem:[#allocation8 + $0x10] sm:$0xff]   ;;  %s2255_s24 = scalar_lea.vmem [#allocation11], %s1241_s8  ;;  %s1286_s26 = sshll.u32 %s1815_s22, 12 }
  0xa3   : > { %460 = vmatprep.subr.bf16.mxu0 %v1499_v5  ;;  %v1518_v17 = vld [vmem:[#allocation8] sm:$0xff]   ;;  %1287 = vmatprep.subr.bf16.mxu1 %v1517_v16  ;;  %v1520_v22 = vld [vmem:[#allocation8 + $0x8] sm:$0xff]   ;;  %v1523_v26 = vld [vmem:[#allocation8 + $0x58] sm:$0xff]   ;;  %s1119_s17 = sshll.u32 %s2255_s24, 4  ;;  %s2352_s6 = scalar_lea.hbm %s2406_s5, %s1286_s26  ;;  %s2354_s17 = int_to_ptr.vmem [resolvable:$true] %s1119_s17 }
  0xa4   : > { %v2038_v20 = vld [vmem:[%s2022_s23] sm:$0xff]  ;;  %v2041_v21 = vld [vmem:[%s2022_s23 + $0x8] sm:$0xff]  ;;  %1288 = vmatpush3.bf16.msra.mxu1 %v1518_v17  ;;  %v2046_v27 = vld [vmem:[%s2022_s23 + $0x10] sm:$0xff]  ;;  %s1106_s22 = scalar_lea.sflag [#allocation4], %s2016_s16  ;;  %s1675_s10 = scalar_lea.vmem %s2354_s17, 4096 }
  0xa5   : > { %v332_v23 = vpack.c.bf16 %v2041_v21, %v2038_v20  ;;  %1289 = vmatprep.subr.bf16.mxu1 %v1519_v18  ;;  %v2049_v28 = vld [vmem:[%s2022_s23 + $0x18] sm:$0xff]  ;;  %v1525_v31 = vld [vmem:[#allocation8 + $0x60] sm:$0xff]   ;;  %v1527_v33 = vld [vmem:[#allocation8 + $0x68] sm:$0xff]   ;;  %v366_v18 = vlaneseq  ;;  %p1676_p4 = scmp.ne.s32.totalorder %s2354_s17, %s1675_s10  ;;  %s1761_s30 = smov [#allocation11]  }
  0xa6   : > { %461 = vmatpush1.bf16.msra.mxu0 %v1501_v6  ;;  %v1524_v29 = vld [vmem:[#allocation8 + $0x18] sm:$0xff]   ;;  %v333_v30 = vpack.c.bf16 %v2049_v28, %v2046_v27  ;;  %v1526_v32 = vld [vmem:[#allocation8 + $0x20] sm:$0xff]   ;;  %v2065_v37 = vld [vmem:[%s2022_s23 + $0x30] sm:$0xff]  ;;  %s1679_s11 = sshll.u32 %s1761_s30, 4  ;;  %s1680_s11 = int_to_ptr.vmem [resolvable:$false] %s1679_s11 }
  0xa7   : > { %462 = vmatprep.subr.bf16.mxu0 %v1502_v7  ;;  %v2056_v34 = vld [vmem:[%s2022_s23 + $0x20] sm:$0xff]  ;;  %v2059_v35 = vld [vmem:[%s2022_s23 + $0x28] sm:$0xff]  ;;  %v2068_v38 = vld [vmem:[%s2022_s23 + $0x38] sm:$0xff]  ;;  %p1677_p5 = pnand %p1676_p4, %p1964_p8  ;;  %s1681_s28 = scalar_lea.vmem %s1680_s11, 8192 }
  0xa8   : > { %1290 = vmatpush3.bf16.msra.mxu1 %v1520_v22  ;;  %v334_v36 = vpack.c.bf16 %v2059_v35, %v2056_v34  ;;  %v335_v39 = vpack.c.bf16 %v2068_v38, %v2065_v37  ;;  %v2074_v40 = vld [vmem:[%s2022_s23 + $0x40] sm:$0xff]  ;;  %v2077_v41 = vld [vmem:[%s2022_s23 + $0x48] sm:$0xff]  ;;  %v2083_v43 = vld [vmem:[%s2022_s23 + $0x50] sm:$0xff]  ;;  %p1682_p12 = scmp.lt.s32.totalorder %s2354_s17, %s1680_s11  ;;  %p1683_p1 = scmp.lt.s32.totalorder %s1681_s28, %s1675_s10 }
  0xa9   : > { %1291 = vmatprep.subr.bf16.mxu1 %v1521_v24  ;;  %v336_v42 = vpack.c.bf16 %v2077_v41, %v2074_v40  ;;  %v2086_v44 = vld [vmem:[%s2022_s23 + $0x58] sm:$0xff]  ;;  %v2092_v46 = vld [vmem:[%s2022_s23 + $0x60] sm:$0xff]  ;;  %v2095_v47 = vld [vmem:[%s2022_s23 + $0x68] sm:$0xff]  ;;  %p1678_p7 = pneg %p1677_p5 }
  0xaa   : > { %463 = vmatpush1.bf16.msra.mxu0 %v1504_v8  ;;  %v337_v45 = vpack.c.bf16 %v2086_v44, %v2083_v43  ;;  %v338_v48 = vpack.c.bf16 %v2095_v47, %v2092_v46  ;;  %v2101_v49 = vld [vmem:[%s2022_s23 + $0x70] sm:$0xff]  ;;  %v2104_v50 = vld [vmem:[%s2022_s23 + $0x78] sm:$0xff]  ;;  %v2110_v52 = vld [vmem:[%s2022_s23 + $0x80] sm:$0xff]  ;;  %p1684_p2 = por %p1683_p1, %p1682_p12 }
  0xab   : > { %464 = vmatprep.subr.bf16.mxu0 %v1505_v9  ;;  %v339_v51 = vpack.c.bf16 %v2104_v50, %v2101_v49  ;;  %v2113_v53 = vld [vmem:[%s2022_s23 + $0x88] sm:$0xff]  ;;  %v2119_v55 = vld [vmem:[%s2022_s23 + $0x90] sm:$0xff]  ;;  %v2122_v56 = vld [vmem:[%s2022_s23 + $0x98] sm:$0xff] }
  0xac   : > { %1292 = vmatpush3.bf16.msra.mxu1 %v1522_v25  ;;  %v340_v54 = vpack.c.bf16 %v2113_v53, %v2110_v52  ;;  %v341_v57 = vpack.c.bf16 %v2122_v56, %v2119_v55  ;;  %v2128_v58 = vld [vmem:[%s2022_s23 + $0xa0] sm:$0xff]  ;;  %v2131_v59 = vld [vmem:[%s2022_s23 + $0xa8] sm:$0xff]  ;;  %v2137_v61 = vld [vmem:[%s2022_s23 + $0xb0] sm:$0xff]  ;;  %p1685_p13 = pnand %p1684_p2, %p1678_p7 }
  0xad   : > { %1293 = vmatprep.subr.bf16.mxu1 %v1523_v26  ;;  %v342_v60 = vpack.c.bf16 %v2131_v59, %v2128_v58  ;;  %v2140_v62 = vld [vmem:[%s2022_s23 + $0xb8] sm:$0xff]  ;;  %v1528_v63 = vld [vmem:[#allocation8 + $0x28] sm:$0xff]   ;;  %v2146_v5 = vld [vmem:[%s2022_s23 + $0xc0] sm:$0xff] }
  0xae   : > { %465 = vmatpush1.bf16.msra.mxu0 %v1507_v10  ;;  %v343_v1 = vpack.c.bf16 %v2140_v62, %v2137_v61  ;;  %v1529_v2 = vld [vmem:[#allocation8 + $0x70] sm:$0xff]   ;;  %v1531_v4 = vld [vmem:[#allocation8 + $0x78] sm:$0xff]   ;;  %v2149_v6 = vld [vmem:[%s2022_s23 + $0xc8] sm:$0xff] }
  0xaf   : > { %466 = vmatprep.subr.bf16.mxu0 %v1508_v11  ;;  %v1530_v3 = vld [vmem:[#allocation8 + $0x30] sm:$0xff]   ;;  %v1532_v7 = vld [vmem:[#allocation8 + $0x38] sm:$0xff]   ;;  %v344_v8 = vpack.c.bf16 %v2149_v6, %v2146_v5 }
  0xb0   : > { %1294 = vmatpush3.bf16.msra.mxu1 %v1524_v29  ;;  %v2155_v9 = vld [vmem:[%s2022_s23 + $0xd0] sm:$0xff]  ;;  %v2158_v10 = vld [vmem:[%s2022_s23 + $0xd8] sm:$0xff] }
  0xb1   : > { %1295 = vmatprep.subr.bf16.mxu1 %v1525_v31  ;;  %v345_v11 = vpack.c.bf16 %v2158_v10, %v2155_v9  ;;  %v2176_v16 = vld [vmem:[%s2022_s23 + $0xf8] sm:$0xff] }
  0xb2   : > { %467 = vmatpush1.bf16.msra.mxu0 %v1510_v12  ;;  %v2164_v12 = vld [vmem:[%s2022_s23 + $0xe0] sm:$0xff] }
  0xb3   : > { %468 = vmatprep.subr.bf16.mxu0 %v1511_v13  ;;  %v2167_v13 = vld [vmem:[%s2022_s23 + $0xe8] sm:$0xff] }
  0xb4   : > { %1296 = vmatpush3.bf16.msra.mxu1 %v1526_v32 }
  0xb5   : > { %1297 = vmatprep.subr.bf16.mxu1 %v1527_v33 }
  0xb6   : > { %469 = vmatpush1.bf16.msra.mxu0 %v1513_v14  ;;  %v346_v14 = vpack.c.bf16 %v2167_v13, %v2164_v12 }
  0xb7   : > { %470 = vmatprep.subr.bf16.mxu0 %v1514_v15  ;;  %v2173_v15 = vld [vmem:[%s2022_s23 + $0xf0] sm:$0xff] }
  0xb8   : > { %1298 = vmatpush3.bf16.msra.mxu1 %v1528_v63  ;;  %v347_v17 = vpack.c.bf16 %v2176_v16, %v2173_v15 }
  0xb9   : > { %1299 = vmatprep.subr.bf16.mxu1 %v1529_v2 }
  0xba   : > { %471 = vmatpush1.bf16.msra.mxu0 %v1516_v19  ;;  %v367_v19 = vshrl.u32 %v366_v18, 7 }
  0xbc   : > { %1300 = vmatpush3.bf16.msra.mxu1 %v1530_v3  ;;  %v368_v22 = vsub.s32 0, %v367_v19  ;;  %v372_v24 = vsub.s32 1, %v367_v19 }
  0xbd   : > { %489 = vmatmul.mubr.bf16.vlgmr.msra.gmra.mrb[0].mxu0 %v332_v23  ;;  %1301 = vmatprep.subr.bf16.mxu1 %v1531_v4  ;;  %v364_v23 = vld [vmem:[#allocation7] sm:$0x3] }
  0xbe   : > { %498 = vmatprep.mubr.bf16.mxu0 %v1760_v0  ;;  %v2180_v25 = vrot.slane %v364_v23, %v368_v22  ;;  %v2182_v26 = vrot.slane %v364_v23, %v372_v24 }
  0xc0   : > { %1302 = vmatpush3.bf16.msra.mxu1 %v1532_v7 }
  0xc5   : > { %499 = vmatmul.mubr.bf16.gmra.mrb[4].mxu0 %v333_v30 }
  0xc6   : > { %508 = vmatprep.mubr.bf16.mxu0 %v1760_v0 }
  0xcd   : > { %509 = vmatmul.mubr.bf16.gmra.mrb[8].mxu0 %v334_v36 }
  0xce   : > { %518 = vmatprep.mubr.bf16.mxu0 %v1760_v0 }
  0xd5   : > { %519 = vmatmul.mubr.bf16.gmra.mrb[12].mxu0 %v335_v39 }
  0xd6   : > { %528 = vmatprep.mubr.bf16.mxu0 %v1760_v0 }
  0xdd   : > { %529 = vmatmul.mubr.bf16.gmra.mrb[16].mxu0 %v336_v42 }
  0xde   : > { %538 = vmatprep.mubr.bf16.mxu0 %v1760_v0 }
  0xe5   : > { %539 = vmatmul.mubr.bf16.gmra.mrb[20].mxu0 %v337_v45 }
  0xe6   : > { %548 = vmatprep.mubr.bf16.mxu0 %v1760_v0 }
  0xed   : > { %549 = vmatmul.mubr.bf16.gmra.mrb[24].mxu0 %v338_v48 }
  0xee   : > { %558 = vmatprep.mubr.bf16.mxu0 %v1760_v0 }
  0xf5   : > { %559 = vmatmul.mubr.bf16.gmra.mrb[28].mxu0 %v339_v51 }
  0xf6   : > { %568 = vmatprep.mubr.bf16.mxu0 %v1760_v0 }
  0xfd   : > { %569 = vmatmul.mubr.bf16.gmra.mrb[32].mxu0 %v340_v54 }
  0xfe   : > { %578 = vmatprep.mubr.bf16.mxu0 %v1760_v0 }
 0x105   : > { %579 = vmatmul.mubr.bf16.gmra.mrb[36].mxu0 %v341_v57 }
 0x106   : > { %588 = vmatprep.mubr.bf16.mxu0 %v1760_v0 }
 0x10d   : > { %589 = vmatmul.mubr.bf16.gmra.mrb[40].mxu0 %v342_v60 }
 0x10e   : > { %598 = vmatprep.mubr.bf16.mxu0 %v1760_v0 }
 0x115   : > { %599 = vmatmul.mubr.bf16.gmra.mrb[44].mxu0 %v343_v1 }
 0x116   : > { %608 = vmatprep.mubr.bf16.mxu0 %v1760_v0 }
 0x11d   : > { %609 = vmatmul.mubr.bf16.gmra.mrb[48].mxu0 %v344_v8 }
 0x11e   : > { %618 = vmatprep.mubr.bf16.mxu0 %v1760_v0 }
 0x125   : > { %619 = vmatmul.mubr.bf16.gmra.mrb[52].mxu0 %v345_v11 }
 0x126   : > { %628 = vmatprep.mubr.bf16.mxu0 %v1760_v0 }
 0x12d   : > { %629 = vmatmul.mubr.bf16.gmra.mrb[56].mxu0 %v346_v14 }
 0x12e   : > { %638 = vmatprep.mubr.bf16.mxu0 %v1760_v0 }
 0x135   : > { %639 = vmatmul.mubr.bf16.gmra.mrb[60].mxu0 %v347_v17 }
 0x190   : > { %v490_v29 = vpop.f32.mrb[0].mxu0 }
 0x191   : > { %v491_v0 = vadd.f32 %v490_v29, %v2180_v25  ;;  %v492_v30 = vpop.f32.mrb[1].mxu0 }
 0x192   : > { %v493_v31 = vadd.f32 %v492_v30, %v2182_v26  ;;  %v494_v32 = vpop.f32.mrb[2].mxu0 }
 0x193   : > { %v495_v33 = vadd.f32 %v494_v32, %v2180_v25  ;;  %v496_v36 = vpop.f32.mrb[3].mxu0  ;;  %v649_v42 = vmax.f32 %v491_v0, 0.0 }
 0x194   : > { %v497_v39 = vadd.f32 %v496_v36, %v2182_v26  ;;  %v650_v48 = vmax.f32 %v493_v31, 0.0 }
 0x195   : > { %v651_v45 = vmax.f32 %v495_v33, 0.0 }
 0x196   : > { %v652_v51 = vmax.f32 %v497_v39, 0.0 }
 0x197   : > { %v713_v54 = vpack.c.bf16 %v651_v45, %v649_v42 }
 0x198   : > { %v500_v57 = vpop.f32.mrb[4].mxu0  ;;  %v714_v60 = vpack.c.bf16 %v652_v51, %v650_v48 }
 0x199   : > { %v501_v63 = vadd.f32 %v500_v57, %v2180_v25  ;;  %v502_v1 = vpop.f32.mrb[5].mxu0 }
 0x19a   : > { %v503_v2 = vadd.f32 %v502_v1, %v2182_v26  ;;  %v504_v3 = vpop.f32.mrb[6].mxu0  ;;  %912 = vmatprep.mubr.bf16.mxu1 %v714_v60 }
 0x19b   : > { %v505_v4 = vadd.f32 %v504_v3, %v2180_v25  ;;  %v506_v7 = vpop.f32.mrb[7].mxu0  ;;  %913 = vmatmul.mubr.bf16.vlgmr.msra.gmra.mrb[0].mxu1 %v713_v54  ;;  %v653_v11 = vmax.f32 %v501_v63, 0.0 }
 0x19c   : > { %v507_v8 = vadd.f32 %v506_v7, %v2182_v26  ;;  %v654_v17 = vmax.f32 %v503_v2, 0.0 }
 0x19d   : > { %v655_v14 = vmax.f32 %v505_v4, 0.0 }
 0x19e   : > { %v656_v18 = vmax.f32 %v507_v8, 0.0 }
 0x19f   : > { %v715_v19 = vpack.c.bf16 %v655_v14, %v653_v11 }
 0x1a0   : > { %v716_v22 = vpack.c.bf16 %v656_v18, %v654_v17  ;;  %v510_v23 = vpop.f32.mrb[8].mxu0 }
 0x1a1   : > { %v511_v24 = vadd.f32 %v510_v23, %v2180_v25  ;;  %v512_v29 = vpop.f32.mrb[9].mxu0 }
 0x1a2   : > { %v513_v0 = vadd.f32 %v512_v29, %v2182_v26  ;;  %v514_v30 = vpop.f32.mrb[10].mxu0  ;;  %920 = vmatprep.mubr.bf16.mxu1 %v716_v22 }
 0x1a3   : > { %v515_v31 = vadd.f32 %v514_v30, %v2180_v25  ;;  %v516_v32 = vpop.f32.mrb[11].mxu0  ;;  %921 = vmatmul.mubr.bf16.gmra.mrb[4].mxu1 %v715_v19  ;;  %v657_v36 = vmax.f32 %v511_v24, 0.0 }
 0x1a4   : > { %v517_v33 = vadd.f32 %v516_v32, %v2182_v26  ;;  %v658_v42 = vmax.f32 %v513_v0, 0.0 }
 0x1a5   : > { %v659_v39 = vmax.f32 %v515_v31, 0.0 }
 0x1a6   : > { %v660_v45 = vmax.f32 %v517_v33, 0.0 }
 0x1a7   : > { %v717_v48 = vpack.c.bf16 %v659_v39, %v657_v36 }
 0x1a8   : > { %v718_v51 = vpack.c.bf16 %v660_v45, %v658_v42  ;;  %v520_v54 = vpop.f32.mrb[12].mxu0 }
 0x1a9   : > { %v521_v57 = vadd.f32 %v520_v54, %v2180_v25  ;;  %v522_v60 = vpop.f32.mrb[13].mxu0 }
 0x1aa   : > { %v523_v63 = vadd.f32 %v522_v60, %v2182_v26  ;;  %v524_v1 = vpop.f32.mrb[14].mxu0  ;;  %928 = vmatprep.mubr.bf16.mxu1 %v718_v51 }
 0x1ab   : > { %v525_v2 = vadd.f32 %v524_v1, %v2180_v25  ;;  %v526_v3 = vpop.f32.mrb[15].mxu0  ;;  %929 = vmatmul.mubr.bf16.gmra.mrb[8].mxu1 %v717_v48  ;;  %v661_v7 = vmax.f32 %v521_v57, 0.0 }
 0x1ac   : > { %v527_v4 = vadd.f32 %v526_v3, %v2182_v26  ;;  %v662_v11 = vmax.f32 %v523_v63, 0.0 }
 0x1ad   : > { %v663_v8 = vmax.f32 %v525_v2, 0.0 }
 0x1ae   : > { %v664_v14 = vmax.f32 %v527_v4, 0.0 }
 0x1af   : > { %v719_v17 = vpack.c.bf16 %v663_v8, %v661_v7 }
 0x1b0   : > { %v720_v18 = vpack.c.bf16 %v664_v14, %v662_v11  ;;  %v530_v19 = vpop.f32.mrb[16].mxu0 }
 0x1b1   : > { %v531_v22 = vadd.f32 %v530_v19, %v2180_v25  ;;  %v532_v23 = vpop.f32.mrb[17].mxu0 }
 0x1b2   : > { %v533_v24 = vadd.f32 %v532_v23, %v2182_v26  ;;  %v534_v29 = vpop.f32.mrb[18].mxu0  ;;  %936 = vmatprep.mubr.bf16.mxu1 %v720_v18 }
 0x1b3   : > { %v535_v0 = vadd.f32 %v534_v29, %v2180_v25  ;;  %v536_v30 = vpop.f32.mrb[19].mxu0  ;;  %937 = vmatmul.mubr.bf16.gmra.mrb[12].mxu1 %v719_v17  ;;  %v665_v32 = vmax.f32 %v531_v22, 0.0 }
 0x1b4   : > { %v537_v31 = vadd.f32 %v536_v30, %v2182_v26  ;;  %v666_v36 = vmax.f32 %v533_v24, 0.0 }
 0x1b5   : > { %v667_v33 = vmax.f32 %v535_v0, 0.0 }
 0x1b6   : > { %v668_v39 = vmax.f32 %v537_v31, 0.0 }
 0x1b7   : > { %v721_v42 = vpack.c.bf16 %v667_v33, %v665_v32 }
 0x1b8   : > { %v722_v45 = vpack.c.bf16 %v668_v39, %v666_v36  ;;  %v540_v48 = vpop.f32.mrb[20].mxu0 }
 0x1b9   : > { %v541_v51 = vadd.f32 %v540_v48, %v2180_v25  ;;  %v542_v54 = vpop.f32.mrb[21].mxu0 }
 0x1ba   : > { %v543_v57 = vadd.f32 %v542_v54, %v2182_v26  ;;  %v544_v60 = vpop.f32.mrb[22].mxu0  ;;  %944 = vmatprep.mubr.bf16.mxu1 %v722_v45 }
 0x1bb   : > { %v545_v63 = vadd.f32 %v544_v60, %v2180_v25  ;;  %v546_v1 = vpop.f32.mrb[23].mxu0  ;;  %945 = vmatmul.mubr.bf16.gmra.mrb[16].mxu1 %v721_v42  ;;  %v669_v3 = vmax.f32 %v541_v51, 0.0 }
 0x1bc   : > { %v547_v2 = vadd.f32 %v546_v1, %v2182_v26  ;;  %v670_v7 = vmax.f32 %v543_v57, 0.0 }
 0x1bd   : > { %v671_v4 = vmax.f32 %v545_v63, 0.0 }
 0x1be   : > { %v672_v8 = vmax.f32 %v547_v2, 0.0 }
 0x1bf   : > { %v723_v11 = vpack.c.bf16 %v671_v4, %v669_v3 }
 0x1c0   : > { %v724_v14 = vpack.c.bf16 %v672_v8, %v670_v7  ;;  %v550_v17 = vpop.f32.mrb[24].mxu0 }
 0x1c1   : > { %v551_v18 = vadd.f32 %v550_v17, %v2180_v25  ;;  %v552_v19 = vpop.f32.mrb[25].mxu0 }
 0x1c2   : > { %v553_v22 = vadd.f32 %v552_v19, %v2182_v26  ;;  %v554_v23 = vpop.f32.mrb[26].mxu0  ;;  %952 = vmatprep.mubr.bf16.mxu1 %v724_v14 }
 0x1c3   : > { %v555_v24 = vadd.f32 %v554_v23, %v2180_v25  ;;  %v556_v29 = vpop.f32.mrb[27].mxu0  ;;  %953 = vmatmul.mubr.bf16.gmra.mrb[20].mxu1 %v723_v11  ;;  %v673_v30 = vmax.f32 %v551_v18, 0.0 }
 0x1c4   : > { %v557_v0 = vadd.f32 %v556_v29, %v2182_v26  ;;  %v674_v32 = vmax.f32 %v553_v22, 0.0 }
 0x1c5   : > { %v675_v31 = vmax.f32 %v555_v24, 0.0 }
 0x1c6   : > { %v676_v33 = vmax.f32 %v557_v0, 0.0 }
 0x1c7   : > { %v725_v36 = vpack.c.bf16 %v675_v31, %v673_v30 }
 0x1c8   : > { %v726_v39 = vpack.c.bf16 %v676_v33, %v674_v32  ;;  %v560_v42 = vpop.f32.mrb[28].mxu0 }
 0x1c9   : > { %v561_v45 = vadd.f32 %v560_v42, %v2180_v25  ;;  %v562_v48 = vpop.f32.mrb[29].mxu0 }
 0x1ca   : > { %v563_v51 = vadd.f32 %v562_v48, %v2182_v26  ;;  %v564_v54 = vpop.f32.mrb[30].mxu0  ;;  %960 = vmatprep.mubr.bf16.mxu1 %v726_v39 }
 0x1cb   : > { %v565_v57 = vadd.f32 %v564_v54, %v2180_v25  ;;  %v566_v60 = vpop.f32.mrb[31].mxu0  ;;  %961 = vmatmul.mubr.bf16.gmra.mrb[24].mxu1 %v725_v36  ;;  %v677_v1 = vmax.f32 %v561_v45, 0.0 }
 0x1cc   : > { %v567_v63 = vadd.f32 %v566_v60, %v2182_v26  ;;  %v678_v3 = vmax.f32 %v563_v51, 0.0 }
 0x1cd   : > { %v679_v2 = vmax.f32 %v565_v57, 0.0 }
 0x1ce   : > { %v680_v4 = vmax.f32 %v567_v63, 0.0 }
 0x1cf   : > { %v727_v7 = vpack.c.bf16 %v679_v2, %v677_v1 }
 0x1d0   : > { %v728_v8 = vpack.c.bf16 %v680_v4, %v678_v3  ;;  %v570_v11 = vpop.f32.mrb[32].mxu0 }
 0x1d1   : > { %v571_v14 = vadd.f32 %v570_v11, %v2180_v25  ;;  %v572_v17 = vpop.f32.mrb[33].mxu0 }
 0x1d2   : > { %v573_v18 = vadd.f32 %v572_v17, %v2182_v26  ;;  %v574_v19 = vpop.f32.mrb[34].mxu0  ;;  %968 = vmatprep.mubr.bf16.mxu1 %v728_v8 }
 0x1d3   : > { %v575_v22 = vadd.f32 %v574_v19, %v2180_v25  ;;  %v576_v23 = vpop.f32.mrb[35].mxu0  ;;  %969 = vmatmul.mubr.bf16.gmra.mrb[28].mxu1 %v727_v7  ;;  %v681_v29 = vmax.f32 %v571_v14, 0.0 }
 0x1d4   : > { %v577_v24 = vadd.f32 %v576_v23, %v2182_v26  ;;  %v682_v30 = vmax.f32 %v573_v18, 0.0 }
 0x1d5   : > { %v683_v0 = vmax.f32 %v575_v22, 0.0 }
 0x1d6   : > { %v684_v31 = vmax.f32 %v577_v24, 0.0 }
 0x1d7   : > { %v729_v32 = vpack.c.bf16 %v683_v0, %v681_v29 }
 0x1d8   : > { %v730_v33 = vpack.c.bf16 %v684_v31, %v682_v30  ;;  %v580_v36 = vpop.f32.mrb[36].mxu0 }
 0x1d9   : > { %v581_v39 = vadd.f32 %v580_v36, %v2180_v25  ;;  %v582_v42 = vpop.f32.mrb[37].mxu0 }
 0x1da   : > { %v583_v45 = vadd.f32 %v582_v42, %v2182_v26  ;;  %v584_v48 = vpop.f32.mrb[38].mxu0  ;;  %976 = vmatprep.mubr.bf16.mxu1 %v730_v33 }
 0x1db   : > { %v585_v51 = vadd.f32 %v584_v48, %v2180_v25  ;;  %v586_v54 = vpop.f32.mrb[39].mxu0  ;;  %977 = vmatmul.mubr.bf16.gmra.mrb[32].mxu1 %v729_v32  ;;  %v685_v60 = vmax.f32 %v581_v39, 0.0 }
 0x1dc   : > { %v587_v57 = vadd.f32 %v586_v54, %v2182_v26  ;;  %v686_v1 = vmax.f32 %v583_v45, 0.0 }
 0x1dd   : > { %v687_v63 = vmax.f32 %v585_v51, 0.0 }
 0x1de   : > { %v688_v2 = vmax.f32 %v587_v57, 0.0 }
 0x1df   : > { %v731_v3 = vpack.c.bf16 %v687_v63, %v685_v60 }
 0x1e0   : > { %v732_v4 = vpack.c.bf16 %v688_v2, %v686_v1  ;;  %v590_v7 = vpop.f32.mrb[40].mxu0 }
 0x1e1   : > { %v591_v8 = vadd.f32 %v590_v7, %v2180_v25  ;;  %v592_v11 = vpop.f32.mrb[41].mxu0 }
 0x1e2   : > { %v593_v14 = vadd.f32 %v592_v11, %v2182_v26  ;;  %v594_v17 = vpop.f32.mrb[42].mxu0  ;;  %984 = vmatprep.mubr.bf16.mxu1 %v732_v4 }
 0x1e3   : > { %v595_v18 = vadd.f32 %v594_v17, %v2180_v25  ;;  %v596_v19 = vpop.f32.mrb[43].mxu0  ;;  %985 = vmatmul.mubr.bf16.gmra.mrb[36].mxu1 %v731_v3  ;;  %v689_v23 = vmax.f32 %v591_v8, 0.0 }
 0x1e4   : > { %v597_v22 = vadd.f32 %v596_v19, %v2182_v26  ;;  %v690_v29 = vmax.f32 %v593_v14, 0.0 }
 0x1e5   : > { %v691_v24 = vmax.f32 %v595_v18, 0.0 }
 0x1e6   : > { %v692_v0 = vmax.f32 %v597_v22, 0.0 }
 0x1e7   : > { %v733_v30 = vpack.c.bf16 %v691_v24, %v689_v23 }
 0x1e8   : > { %v734_v31 = vpack.c.bf16 %v692_v0, %v690_v29  ;;  %v600_v32 = vpop.f32.mrb[44].mxu0 }
 0x1e9   : > { %v601_v33 = vadd.f32 %v600_v32, %v2180_v25  ;;  %v602_v36 = vpop.f32.mrb[45].mxu0 }
 0x1ea   : > { %v603_v39 = vadd.f32 %v602_v36, %v2182_v26  ;;  %v604_v42 = vpop.f32.mrb[46].mxu0  ;;  %992 = vmatprep.mubr.bf16.mxu1 %v734_v31 }
 0x1eb   : > { %v605_v45 = vadd.f32 %v604_v42, %v2180_v25  ;;  %v606_v48 = vpop.f32.mrb[47].mxu0  ;;  %993 = vmatmul.mubr.bf16.gmra.mrb[40].mxu1 %v733_v30  ;;  %v693_v54 = vmax.f32 %v601_v33, 0.0 }
 0x1ec   : > { %v607_v51 = vadd.f32 %v606_v48, %v2182_v26  ;;  %v694_v60 = vmax.f32 %v603_v39, 0.0 }
 0x1ed   : > { %v695_v57 = vmax.f32 %v605_v45, 0.0 }
 0x1ee   : > { %v696_v63 = vmax.f32 %v607_v51, 0.0 }
 0x1ef   : > { %v735_v1 = vpack.c.bf16 %v695_v57, %v693_v54 }
 0x1f0   : > { %v736_v2 = vpack.c.bf16 %v696_v63, %v694_v60  ;;  %v610_v3 = vpop.f32.mrb[48].mxu0 }
 0x1f1   : > { %v611_v4 = vadd.f32 %v610_v3, %v2180_v25  ;;  %v612_v7 = vpop.f32.mrb[49].mxu0 }
 0x1f2   : > { %v613_v8 = vadd.f32 %v612_v7, %v2182_v26  ;;  %v614_v11 = vpop.f32.mrb[50].mxu0  ;;  %1000 = vmatprep.mubr.bf16.mxu1 %v736_v2 }
 0x1f3   : > { %v615_v14 = vadd.f32 %v614_v11, %v2180_v25  ;;  %v616_v17 = vpop.f32.mrb[51].mxu0  ;;  %1001 = vmatmul.mubr.bf16.gmra.mrb[44].mxu1 %v735_v1  ;;  %v697_v19 = vmax.f32 %v611_v4, 0.0 }
 0x1f4   : > { %v617_v18 = vadd.f32 %v616_v17, %v2182_v26  ;;  %v698_v23 = vmax.f32 %v613_v8, 0.0 }
 0x1f5   : > { %v699_v22 = vmax.f32 %v615_v14, 0.0 }
 0x1f6   : > { %v700_v24 = vmax.f32 %v617_v18, 0.0 }
 0x1f7   : > { %v737_v29 = vpack.c.bf16 %v699_v22, %v697_v19 }
 0x1f8   : > { %v738_v0 = vpack.c.bf16 %v700_v24, %v698_v23  ;;  %v620_v30 = vpop.f32.mrb[52].mxu0 }
 0x1f9   : > { %v621_v31 = vadd.f32 %v620_v30, %v2180_v25  ;;  %v622_v32 = vpop.f32.mrb[53].mxu0 }
 0x1fa   : > { %v623_v33 = vadd.f32 %v622_v32, %v2182_v26  ;;  %v624_v36 = vpop.f32.mrb[54].mxu0  ;;  %1008 = vmatprep.mubr.bf16.mxu1 %v738_v0 }
 0x1fb   : > { %v625_v39 = vadd.f32 %v624_v36, %v2180_v25  ;;  %v626_v42 = vpop.f32.mrb[55].mxu0  ;;  %1009 = vmatmul.mubr.bf16.gmra.mrb[48].mxu1 %v737_v29  ;;  %v701_v48 = vmax.f32 %v621_v31, 0.0 }
 0x1fc   : > { %v627_v45 = vadd.f32 %v626_v42, %v2182_v26  ;;  %v702_v54 = vmax.f32 %v623_v33, 0.0 }
 0x1fd   : > { %v703_v51 = vmax.f32 %v625_v39, 0.0 }
 0x1fe   : > { %v704_v57 = vmax.f32 %v627_v45, 0.0 }
 0x1ff   : > { %v739_v60 = vpack.c.bf16 %v703_v51, %v701_v48 }
 0x200   : > { %v740_v63 = vpack.c.bf16 %v704_v57, %v702_v54  ;;  %v630_v1 = vpop.f32.mrb[56].mxu0 }
 0x201   : > { %v631_v2 = vadd.f32 %v630_v1, %v2180_v25  ;;  %v632_v3 = vpop.f32.mrb[57].mxu0 }
 0x202   : > { %v633_v4 = vadd.f32 %v632_v3, %v2182_v26  ;;  %v634_v7 = vpop.f32.mrb[58].mxu0  ;;  %1016 = vmatprep.mubr.bf16.mxu1 %v740_v63  ;;  %v2248_v63 = vld [vmem:[#allocation10] ss:$0 sm:$0xff] }
 0x203   : > { %v635_v8 = vadd.f32 %v634_v7, %v2180_v25  ;;  %v636_v11 = vpop.f32.mrb[59].mxu0  ;;  %1017 = vmatmul.mubr.bf16.gmra.mrb[52].mxu1 %v739_v60  ;;  %v705_v17 = vmax.f32 %v631_v2, 0.0 }
 0x204   : > { %v637_v14 = vadd.f32 %v636_v11, %v2182_v26  ;;  %v706_v19 = vmax.f32 %v633_v4, 0.0 }
 0x205   : > { %v707_v18 = vmax.f32 %v635_v8, 0.0 }
 0x206   : > { %v708_v22 = vmax.f32 %v637_v14, 0.0 }
 0x207   : > { %v741_v23 = vpack.c.bf16 %v707_v18, %v705_v17 }
 0x208   : > { %v742_v24 = vpack.c.bf16 %v708_v22, %v706_v19  ;;  %v640_v29 = vpop.f32.mrb[60].mxu0 }
 0x209   : > { %v641_v0 = vadd.f32 %v640_v29, %v2180_v25  ;;  %v642_v30 = vpop.f32.mrb[61].mxu0 }
 0x20a   : > { %v643_v31 = vadd.f32 %v642_v30, %v2182_v26  ;;  %v644_v32 = vpop.f32.mrb[62].mxu0  ;;  %1024 = vmatprep.mubr.bf16.mxu1 %v742_v24 }
 0x20b   : > { %v645_v33 = vadd.f32 %v644_v32, %v2180_v25  ;;  %v646_v36 = vpop.f32.mrb[63].mxu0  ;;  %1025 = vmatmul.mubr.bf16.gmra.mrb[56].mxu1 %v741_v23  ;;  %v709_v42 = vmax.f32 %v641_v0, 0.0 }
 0x20c   : > { %v647_v39 = vadd.f32 %v646_v36, %v2182_v26  ;;  %v710_v48 = vmax.f32 %v643_v31, 0.0 }
 0x20d   : > { %v711_v45 = vmax.f32 %v645_v33, 0.0 }
 0x20e   : > { %v712_v51 = vmax.f32 %v647_v39, 0.0 }
 0x20f   : > { %v743_v54 = vpack.c.bf16 %v711_v45, %v709_v42 }
 0x210   : > { %v744_v57 = vpack.c.bf16 %v712_v51, %v710_v48 }
 0x212   : > { %1032 = vmatprep.mubr.bf16.mxu1 %v744_v57 }
 0x213   : > { %1033 = vmatmul.mubr.bf16.gmra.mrb[60].mxu1 %v743_v54 }
 0x26e   : > { %v1303_v60 = vpop.f32.mrb[0].mxu1 }
 0x26f   : > { %v1304_v1 = vpop.f32.mrb[1].mxu1 }
 0x270   : > { %v1305_v2 = vadd.f32 %v1304_v1, %v1303_v60  ;;  %v1306_v3 = vpop.f32.mrb[2].mxu1 }
 0x271   : > { %v1307_v25 = vpop.f32.mrb[3].mxu1 }
 0x272   : > { %v915_v4 = vadd.f32 %v1305_v2, %v2248_v63  ;;  %v1308_v7 = vadd.f32 %v1307_v25, %v1306_v3 }
 0x274   : > { %v1041_v26 = vadd.f32 %v915_v4, %v2038_v20  ;;  %v918_v8 = vadd.f32 %v1308_v7, %v2248_v63 }
 0x276   : > { %1073 = vst [vmem:[%s2255_s24] sm:$0xff] %v1041_v26  ;;  %v1042_v11 = vadd.f32 %v918_v8, %v2041_v21  ;;  %v1309_v14 = vpop.f32.mrb[4].mxu1 }
 0x277   : > { %v1310_v17 = vpop.f32.mrb[5].mxu1 }
 0x278   : > { %1074 = vst [vmem:[%s2255_s24 + $0x8] sm:$0xff] %v1042_v11  ;;  %v1311_v18 = vadd.f32 %v1310_v17, %v1309_v14  ;;  %v1312_v19 = vpop.f32.mrb[6].mxu1 }
 0x279   : > { %v1313_v22 = vpop.f32.mrb[7].mxu1 }
 0x27a   : > { %v923_v20 = vadd.f32 %v1311_v18, %v2248_v63  ;;  %v1314_v23 = vadd.f32 %v1313_v22, %v1312_v19 }
 0x27c   : > { %v1043_v24 = vadd.f32 %v923_v20, %v2046_v27  ;;  %v926_v29 = vadd.f32 %v1314_v23, %v2248_v63 }
 0x27e   : > { %1075 = vst [vmem:[%s2255_s24 + $0x10] sm:$0xff] %v1043_v24  ;;  %v1044_v0 = vadd.f32 %v926_v29, %v2049_v28  ;;  %v1315_v30 = vpop.f32.mrb[8].mxu1 }
 0x27f   : > { %v1316_v21 = vpop.f32.mrb[9].mxu1 }
 0x280   : > { %1076 = vst [vmem:[%s2255_s24 + $0x18] sm:$0xff] %v1044_v0  ;;  %v1317_v31 = vadd.f32 %v1316_v21, %v1315_v30  ;;  %v1318_v32 = vpop.f32.mrb[10].mxu1 }
 0x281   : > { %v1319_v33 = vpop.f32.mrb[11].mxu1 }
 0x282   : > { %v931_v36 = vadd.f32 %v1317_v31, %v2248_v63  ;;  %v1320_v39 = vadd.f32 %v1319_v33, %v1318_v32 }
 0x284   : > { %v1045_v42 = vadd.f32 %v931_v36, %v2056_v34  ;;  %v934_v27 = vadd.f32 %v1320_v39, %v2248_v63 }
 0x286   : > { %1077 = vst [vmem:[%s2255_s24 + $0x20] sm:$0xff] %v1045_v42  ;;  %v1046_v45 = vadd.f32 %v934_v27, %v2059_v35  ;;  %v1321_v48 = vpop.f32.mrb[12].mxu1 }
 0x287   : > { %v1322_v28 = vpop.f32.mrb[13].mxu1 }
 0x288   : > { %1078 = vst [vmem:[%s2255_s24 + $0x28] sm:$0xff] %v1046_v45  ;;  %v1323_v51 = vadd.f32 %v1322_v28, %v1321_v48  ;;  %v1324_v54 = vpop.f32.mrb[14].mxu1 }
 0x289   : > { %v1325_v57 = vpop.f32.mrb[15].mxu1 }
 0x28a   : > { %v939_v60 = vadd.f32 %v1323_v51, %v2248_v63  ;;  %v1326_v1 = vadd.f32 %v1325_v57, %v1324_v54 }
 0x28c   : > { %v1047_v2 = vadd.f32 %v939_v60, %v2065_v37  ;;  %v942_v34 = vadd.f32 %v1326_v1, %v2248_v63 }
 0x28e   : > { %1079 = vst [vmem:[%s2255_s24 + $0x30] sm:$0xff] %v1047_v2  ;;  %v1048_v3 = vadd.f32 %v942_v34, %v2068_v38  ;;  %v1327_v25 = vpop.f32.mrb[16].mxu1 }
 0x28f   : > { %v1328_v35 = vpop.f32.mrb[17].mxu1 }
 0x290   : > { %1080 = vst [vmem:[%s2255_s24 + $0x38] sm:$0xff] %v1048_v3  ;;  %v1329_v4 = vadd.f32 %v1328_v35, %v1327_v25  ;;  %v1330_v7 = vpop.f32.mrb[18].mxu1 }
 0x291   : > { %v1331_v26 = vpop.f32.mrb[19].mxu1 }
 0x292   : > { %v947_v8 = vadd.f32 %v1329_v4, %v2248_v63  ;;  %v1332_v11 = vadd.f32 %v1331_v26, %v1330_v7 }
 0x294   : > { %v1049_v14 = vadd.f32 %v947_v8, %v2074_v40  ;;  %v950_v37 = vadd.f32 %v1332_v11, %v2248_v63 }
 0x296   : > { %1081 = vst [vmem:[%s2255_s24 + $0x40] sm:$0xff] %v1049_v14  ;;  %v1050_v17 = vadd.f32 %v950_v37, %v2077_v41  ;;  %v1333_v18 = vpop.f32.mrb[20].mxu1 }
 0x297   : > { %v1334_v38 = vpop.f32.mrb[21].mxu1 }
 0x298   : > { %1082 = vst [vmem:[%s2255_s24 + $0x48] sm:$0xff] %v1050_v17  ;;  %v1335_v19 = vadd.f32 %v1334_v38, %v1333_v18  ;;  %v1336_v22 = vpop.f32.mrb[22].mxu1 }
 0x299   : > { %v1337_v20 = vpop.f32.mrb[23].mxu1 }
 0x29a   : > { %v955_v23 = vadd.f32 %v1335_v19, %v2248_v63  ;;  %v1338_v24 = vadd.f32 %v1337_v20, %v1336_v22 }
 0x29c   : > { %v1051_v29 = vadd.f32 %v955_v23, %v2083_v43  ;;  %v958_v40 = vadd.f32 %v1338_v24, %v2248_v63 }
 0x29e   : > { %1083 = vst [vmem:[%s2255_s24 + $0x50] sm:$0xff] %v1051_v29  ;;  %v1052_v0 = vadd.f32 %v958_v40, %v2086_v44  ;;  %v1339_v30 = vpop.f32.mrb[24].mxu1 }
 0x29f   : > { %v1340_v41 = vpop.f32.mrb[25].mxu1 }
 0x2a0   : > { %1084 = vst [vmem:[%s2255_s24 + $0x58] sm:$0xff] %v1052_v0  ;;  %v1341_v21 = vadd.f32 %v1340_v41, %v1339_v30  ;;  %v1342_v31 = vpop.f32.mrb[26].mxu1 }
 0x2a1   : > { %v1343_v32 = vpop.f32.mrb[27].mxu1 }
 0x2a2   : > { %v963_v33 = vadd.f32 %v1341_v21, %v2248_v63  ;;  %v1344_v36 = vadd.f32 %v1343_v32, %v1342_v31 }
 0x2a4   : > { %v1053_v39 = vadd.f32 %v963_v33, %v2092_v46  ;;  %v966_v43 = vadd.f32 %v1344_v36, %v2248_v63 }
 0x2a6   : > { %1085 = vst [vmem:[%s2255_s24 + $0x60] sm:$0xff] %v1053_v39  ;;  %v1054_v42 = vadd.f32 %v966_v43, %v2095_v47  ;;  %v1345_v27 = vpop.f32.mrb[28].mxu1 }
 0x2a7   : > { %v1346_v44 = vpop.f32.mrb[29].mxu1 }
 0x2a8   : > { %1086 = vst [vmem:[%s2255_s24 + $0x68] sm:$0xff] %v1054_v42  ;;  %v1347_v45 = vadd.f32 %v1346_v44, %v1345_v27  ;;  %v1348_v48 = vpop.f32.mrb[30].mxu1 }
 0x2a9   : > { %v1349_v28 = vpop.f32.mrb[31].mxu1 }
 0x2aa   : > { %v971_v51 = vadd.f32 %v1347_v45, %v2248_v63  ;;  %v1350_v54 = vadd.f32 %v1349_v28, %v1348_v48 }
 0x2ac   : > { %v1055_v57 = vadd.f32 %v971_v51, %v2101_v49  ;;  %v974_v46 = vadd.f32 %v1350_v54, %v2248_v63 }
 0x2ae   : > { %1087 = vst [vmem:[%s2255_s24 + $0x70] sm:$0xff] %v1055_v57  ;;  %v1056_v60 = vadd.f32 %v974_v46, %v2104_v50  ;;  %v1351_v1 = vpop.f32.mrb[32].mxu1 }
 0x2af   : > { %v1352_v47 = vpop.f32.mrb[33].mxu1 }
 0x2b0   : > { %1088 = vst [vmem:[%s2255_s24 + $0x78] sm:$0xff] %v1056_v60  ;;  %v1353_v2 = vadd.f32 %v1352_v47, %v1351_v1  ;;  %v1354_v34 = vpop.f32.mrb[34].mxu1 }
 0x2b1   : > { %v1355_v3 = vpop.f32.mrb[35].mxu1 }
 0x2b2   : > { %v979_v25 = vadd.f32 %v1353_v2, %v2248_v63  ;;  %v1356_v35 = vadd.f32 %v1355_v3, %v1354_v34 }
 0x2b4   : > { %v1057_v4 = vadd.f32 %v979_v25, %v2110_v52  ;;  %v982_v49 = vadd.f32 %v1356_v35, %v2248_v63 }
 0x2b6   : > { %1089 = vst [vmem:[%s2255_s24 + $0x80] sm:$0xff] %v1057_v4  ;;  %v1058_v7 = vadd.f32 %v982_v49, %v2113_v53  ;;  %v1357_v26 = vpop.f32.mrb[36].mxu1 }
 0x2b7   : > { %v1358_v50 = vpop.f32.mrb[37].mxu1 }
 0x2b8   : > { %1090 = vst [vmem:[%s2255_s24 + $0x88] sm:$0xff] %v1058_v7  ;;  %v1359_v8 = vadd.f32 %v1358_v50, %v1357_v26  ;;  %v1360_v11 = vpop.f32.mrb[38].mxu1 }
 0x2b9   : > { %v1361_v14 = vpop.f32.mrb[39].mxu1 }
 0x2ba   : > { %v987_v37 = vadd.f32 %v1359_v8, %v2248_v63  ;;  %v1362_v17 = vadd.f32 %v1361_v14, %v1360_v11 }
 0x2bc   : > { %v1059_v18 = vadd.f32 %v987_v37, %v2119_v55  ;;  %v990_v52 = vadd.f32 %v1362_v17, %v2248_v63 }
 0x2be   : > { %1091 = vst [vmem:[%s2255_s24 + $0x90] sm:$0xff] %v1059_v18  ;;  %v1060_v38 = vadd.f32 %v990_v52, %v2122_v56  ;;  %v1363_v19 = vpop.f32.mrb[40].mxu1 }
 0x2bf   : > { %v1364_v53 = vpop.f32.mrb[41].mxu1 }
 0x2c0   : > { %1092 = vst [vmem:[%s2255_s24 + $0x98] sm:$0xff] %v1060_v38  ;;  %v1365_v22 = vadd.f32 %v1364_v53, %v1363_v19  ;;  %v1366_v20 = vpop.f32.mrb[42].mxu1 }
 0x2c1   : > { %v1367_v23 = vpop.f32.mrb[43].mxu1 }
 0x2c2   : > { %v995_v24 = vadd.f32 %v1365_v22, %v2248_v63  ;;  %v1368_v29 = vadd.f32 %v1367_v23, %v1366_v20 }
 0x2c4   : > { %v1061_v40 = vadd.f32 %v995_v24, %v2128_v58  ;;  %v998_v55 = vadd.f32 %v1368_v29, %v2248_v63 }
 0x2c6   : > { %1093 = vst [vmem:[%s2255_s24 + $0xa0] sm:$0xff] %v1061_v40  ;;  %v1062_v0 = vadd.f32 %v998_v55, %v2131_v59  ;;  %v1369_v30 = vpop.f32.mrb[44].mxu1 }
 0x2c7   : > { %v1370_v56 = vpop.f32.mrb[45].mxu1 }
 0x2c8   : > { %1094 = vst [vmem:[%s2255_s24 + $0xa8] sm:$0xff] %v1062_v0  ;;  %v1371_v41 = vadd.f32 %v1370_v56, %v1369_v30  ;;  %v1372_v21 = vpop.f32.mrb[46].mxu1 }
 0x2c9   : > { %v1373_v31 = vpop.f32.mrb[47].mxu1 }
 0x2ca   : > { %v1003_v32 = vadd.f32 %v1371_v41, %v2248_v63  ;;  %v1374_v33 = vadd.f32 %v1373_v31, %v1372_v21 }
 0x2cc   : > { %v1063_v36 = vadd.f32 %v1003_v32, %v2137_v61  ;;  %v1006_v58 = vadd.f32 %v1374_v33, %v2248_v63 }
 0x2ce   : > { %1095 = vst [vmem:[%s2255_s24 + $0xb0] sm:$0xff] %v1063_v36  ;;  %v1064_v39 = vadd.f32 %v1006_v58, %v2140_v62  ;;  %v1375_v43 = vpop.f32.mrb[48].mxu1 }
 0x2cf   : > { %v1376_v59 = vpop.f32.mrb[49].mxu1 }
 0x2d0   : > { %1096 = vst [vmem:[%s2255_s24 + $0xb8] sm:$0xff] %v1064_v39  ;;  %v1377_v42 = vadd.f32 %v1376_v59, %v1375_v43  ;;  %v1378_v27 = vpop.f32.mrb[50].mxu1 }
 0x2d1   : > { %v1379_v44 = vpop.f32.mrb[51].mxu1 }
 0x2d2   : > { %v1011_v45 = vadd.f32 %v1377_v42, %v2248_v63  ;;  %v1380_v48 = vadd.f32 %v1379_v44, %v1378_v27 }
 0x2d4   : > { %v1065_v28 = vadd.f32 %v1011_v45, %v2146_v5  ;;  %v1014_v61 = vadd.f32 %v1380_v48, %v2248_v63 }
 0x2d6   : > { %1097 = vst [vmem:[%s2255_s24 + $0xc0] sm:$0xff] %v1065_v28  ;;  %v1066_v51 = vadd.f32 %v1014_v61, %v2149_v6  ;;  %v1381_v54 = vpop.f32.mrb[52].mxu1 }
 0x2d7   : > { %v1382_v62 = vpop.f32.mrb[53].mxu1 }
 0x2d8   : > { %1098 = vst [vmem:[%s2255_s24 + $0xc8] sm:$0xff] %v1066_v51  ;;  %v1383_v57 = vadd.f32 %v1382_v62, %v1381_v54  ;;  %v1384_v46 = vpop.f32.mrb[54].mxu1 }
 0x2d9   : > { %v1385_v60 = vpop.f32.mrb[55].mxu1 }
 0x2da   : > { %v1019_v1 = vadd.f32 %v1383_v57, %v2248_v63  ;;  %v1386_v47 = vadd.f32 %v1385_v60, %v1384_v46 }
 0x2dc   : > { %v1067_v2 = vadd.f32 %v1019_v1, %v2155_v9  ;;  %v1022_v5 = vadd.f32 %v1386_v47, %v2248_v63 }
 0x2de   : > { %1099 = vst [vmem:[%s2255_s24 + $0xd0] sm:$0xff] %v1067_v2  ;;  %v1068_v34 = vadd.f32 %v1022_v5, %v2158_v10  ;;  %v1387_v3 = vpop.f32.mrb[56].mxu1 }
 0x2df   : > { %v1388_v6 = vpop.f32.mrb[57].mxu1 }
 0x2e0   : > { %1100 = vst [vmem:[%s2255_s24 + $0xd8] sm:$0xff] %v1068_v34  ;;  %v1389_v25 = vadd.f32 %v1388_v6, %v1387_v3  ;;  %v1390_v35 = vpop.f32.mrb[58].mxu1 }
 0x2e1   : > { %v1391_v4 = vpop.f32.mrb[59].mxu1 }
 0x2e2   : > { %v1027_v49 = vadd.f32 %v1389_v25, %v2248_v63  ;;  %v1392_v7 = vadd.f32 %v1391_v4, %v1390_v35 }
 0x2e4   : > { %v1069_v26 = vadd.f32 %v1027_v49, %v2164_v12  ;;  %v1030_v9 = vadd.f32 %v1392_v7, %v2248_v63 }
 0x2e6   : > { %1101 = vst [vmem:[%s2255_s24 + $0xe0] sm:$0xff] %v1069_v26  ;;  %v1070_v50 = vadd.f32 %v1030_v9, %v2167_v13  ;;  %v1393_v10 = vpop.f32.mrb[60].mxu1 }
 0x2e7   : > { %v1394_v8 = vpop.f32.mrb[61].mxu1 }
 0x2e8   : > { %1102 = vst [vmem:[%s2255_s24 + $0xe8] sm:$0xff] %v1070_v50  ;;  %v1395_v11 = vadd.f32 %v1394_v8, %v1393_v10  ;;  %v1396_v14 = vpop.f32.mrb[62].mxu1 }
 0x2e9   : > { %v1397_v37 = vpop.f32.mrb[63].mxu1 }
 0x2ea   : > { %v1035_v17 = vadd.f32 %v1395_v11, %v2248_v63  ;;  %v1398_v18 = vadd.f32 %v1397_v37, %v1396_v14 }
 0x2ec   : > { %v1071_v12 = vadd.f32 %v1035_v17, %v2173_v15  ;;  %v1038_v52 = vadd.f32 %v1398_v18, %v2248_v63 }
 0x2ee   : > { %1103 = vst [vmem:[%s2255_s24 + $0xf0] sm:$0xff] %v1071_v12  ;;  %v1072_v13 = vadd.f32 %v1038_v52, %v2176_v16 }
 0x2f0   : > { %1104 = vst [vmem:[%s2255_s24 + $0xf8] sm:$0xff] %v1072_v13 }
 0x2f1   : > { %1688 = shalt.err (!%p1685_p13)
}
 0x2f2   : > { %s1689_s29 = scalar_lea.hbm %s2352_s6, 4096  ;;  %s1693_s9 = scalar_lea.hbm %s2406_s5, 8192 }
 0x2f3   : > { %p1690_p9 = scmp.ne.s32.totalorder %s2352_s6, %s1689_s29  ;;  %p1694_p6 = scmp.lt.u32.totalorder %s2352_s6, %s2406_s5 }
 0x2f4   : > { %p1695_p10 = scmp.lt.u32.totalorder %s1693_s9, %s1689_s29  ;;  %p1697_p4 = scmp.lt.u32.totalorder %s1689_s29, %s2352_s6 }
 0x2f5   : > { %p1691_p0 = pnand %p1690_p9, %p1964_p8 }
 0x2f6   : > { %p1696_p3 = por %p1695_p10, %p1694_p6 }
 0x2f7   : > { %p1692_p11 = pneg %p1691_p0 }
 0x2f8   : > { %p1698_p5 = por %p1697_p4, %p1696_p3 }
 0x2fa   : > { %p1699_p7 = pnand %p1698_p5, %p1692_p11 }
 0x2fc   : > { %1702 = shalt.err (!%p1699_p7)
}
 0x2fd   : > { %s1762_s26 = smov 128   ;;  %s1763_s13 = smov 8  }
 0x2fe   : > { %1417 = dma.vmem_to_hbm [thread:$0]  (%p1964_p8), %s2354_s17, 4096, %s2352_s6, %s1106_s22, %s1762_s26, %s1762_s26, %s1763_s13  }
 0x2ff PF: > { %s1134_s7 = sand.u32 1, %s1737_s18   ;;  %p2426_p12 = scmp.ne.s32.totalorder %s2412_s25, 0 }
 0x300   : > { %p2427_p1 = scmp.ge.s32.totalorder %s1749_s21, 2  ;;  %s1135_s10 = scalar_lea.sflag [#allocation4], %s1134_s7 }
 0x302   : > { %p1437_p2 = pnand %p2427_p1, %p2426_p12 }
 0x304   : > { %1732 = dma.done.wait (!%p1437_p2), %s1135_s10, 4096  }
 0x305   : > { %1734 = vsyncadd (!%p1437_p2), %s1135_s10, 4294963200  ;;  %p20_p13 = scmp.ge.s32.totalorder %s1951_s12, 4   ;;  %s2428_s18 = smov %s1741_s19 }
 0x306   : > { %s2429_s19 = smov %s1745_s20  ;;  %s2430_s20 = smov %s1960_s15 }
 0x307   : > { %s2431_s21 = smov %s1951_s12  ;;  %22 = sbr.rel (!%p20_p13) target bundleno = 7 (0x7), region = 101 }
 0x30e   :  { %1140 = vsyncpa [#allocation3], 1 }
 0x30f   :  { %1142 = vsyncpa [#allocation3 + $0x1], 1 }
 0x310   :  { %1143 = vsyncpa [#allocation6], 1 }
 0x311   :  { %1144 = vsyncpa [#allocation9], 1 }
 0x312   :  { %1145 = vsyncpa [#allocation4], 1 }
 0x313   :  { %1147 = vsyncpa [#allocation4 + $0x1], 1 }

// kernel: tpu_custom_call.1
= control target key start
LH: loop header
LB: loop body
LE: loop exit
PB: predicated region body
PF: predicated region fallthrough
CT: control target
= control target key end

     0   :  { %10 = vsyncpa [#allocation3], 0  ;;  %s2401_s0 = inlined_call_operand.hbm [shape: f32[512,128], index: 0, kind: input, shape index: {}]   ;;  %s2402_s1 = inlined_call_operand.hbm [shape: bf16[128,256], index: 1, kind: input, shape index: {}]   ;;  %s2403_s2 = inlined_call_operand.hbm [shape: f32[1,256], index: 2, kind: input, shape index: {}]   ;;  %s2404_s3 = inlined_call_operand.hbm [shape: bf16[256,128], index: 3, kind: input, shape index: {}]   ;;  %s2405_s4 = inlined_call_operand.hbm [shape: f32[1,128], index: 4, kind: input, shape index: {}]   ;;  %s2406_s5 = inlined_call_operand.hbm [shape: f32[512,128], index: 5, kind: output, shape index: {}]  }
   0x1   :  { %12 = vsyncpa [#allocation3 + $0x1], 0 }
   0x2   :  { %13 = vsyncpa [#allocation6], 0 }
   0x3   :  { %14 = vsyncpa [#allocation9], 0 }
   0x4   :  { %15 = vsyncpa [#allocation4], 0 }
   0x5   :  { %17 = vsyncpa [#allocation4 + $0x1], 0  ;;  %s1794_s18 = smov 0   ;;  %s1796_s19 = smov 0  }
   0x6   :  { %s1798_s20 = smov 0   ;;  %s1800_s21 = smov 0  }
   0x7 LB: > { %s1815_s22 = sadd.s32 4294967295, %s1749_s21   ;;  %s1230_s23 = sadd.s32 4294967294, %s1749_s21   ;;  %s1749_s21 = sphi %s1800_s21, %s2431_s21   ;;  %s1745_s20 = sphi %s1798_s20, %s2430_s20   ;;  %s1741_s19 = sphi %s1796_s19, %s2429_s19   ;;  %s1737_s18 = sphi %s1794_s18, %s2428_s18  }
   0x8   : > { %p43_p0 = scmp.ne.s32.totalorder %s1741_s19, %s1737_s18  ;;  %p2407_p1 = scmp.eq.s32.totalorder %s1815_s22, 0 }
   0x9   : > { %p157_p3 = scmp.eq.s32.totalorder %s1230_s23, 1  ;;  %p1231_p5 = scmp.ge.s32.totalorder %s1749_s21, 1 }
   0xa   : > { %p1824_p4 = por %p2407_p1, %p43_p0  ;;  %p164_p7 = scmp.lt.s32.totalorder %s1749_s21, 3 }
   0xb   : > { %p1829_p6 = por %p157_p3, %p43_p0  ;;  %s1751_s27 = smov [#allocation5]  }
   0xc   : > { %s2411_s24 = scalar_select %p1824_p4, 1, 0 }
   0xd   : > { %s2412_s25 = scalar_select %p1829_p6, 1, 0 }
   0xe   : > { %p1834_p8 = pnand %p1231_p5, %p164_p7  ;;  %s176_s28 = sshll.u32 %s1751_s27, 4  ;;  %s1838_s28 = int_to_ptr.vmem [resolvable:$true] %s176_s28 }
   0xf   : > { %s1752_s30 = smov [#allocation8]   ;;  %s1533_s9 = scalar_lea.hbm %s2402_s1, 2048 }
  0x10   : > { %s2413_s26 = scalar_select %p1834_p8, 1, 0 }
  0x11   : > { %p1419_p9 = pneg %p1834_p8  ;;  %s200_s6 = sshll.u32 %s1752_s30, 4  ;;  %s1849_s6 = int_to_ptr.vmem [resolvable:$true] %s200_s6 }
  0x12   : > { %p1534_p12 = scmp.ne.s32.totalorder %s2402_s1, %s1533_s9  ;;  %p1540_p5 = scmp.lt.u32.totalorder %s1533_s9, %s2402_s1 }
  0x13   : > { %p1845_p11 = pnand %p1419_p9, %p2407_p1 }
  0x15   : > { %p1859_p13 = pneg %p1845_p11 }
  0x17   : > { %p1536_p0 = pnand %p1859_p13, %p1534_p12 }
  0x19   : > { %p1537_p3 = pneg %p1536_p0 }
  0x1b   : > { %p1542_p7 = pnand %p1540_p5, %p1537_p3 }
  0x1d   : > { %1545 = shalt.err (!%p1542_p7)
}
  0x1e   : > { %s1546_s15 = scalar_lea.vmem %s1838_s28, 2048  ;;  %p1554_p2 = scmp.lt.s32.totalorder %s1838_s28, %s1838_s28 }
  0x1f   : > { %p1547_p9 = scmp.ne.s32.totalorder %s1838_s28, %s1546_s15  ;;  %p1555_p6 = scmp.lt.s32.totalorder %s1546_s15, %s1546_s15 }
  0x21   : > { %p1549_p10 = pnand %p1547_p9, %p1859_p13  ;;  %p1556_p12 = por %p1555_p6, %p1554_p2 }
  0x23   : > { %p1550_p1 = pneg %p1549_p10 }
  0x25   : > { %p1557_p0 = pnand %p1556_p12, %p1550_p1 }
  0x27   : > { %1560 = shalt.err (!%p1557_p0)
}
  0x28   : > { %s2408_s16 = smov 128   ;;  %s1754_s17 = smov 8  }
  0x29   : > { %1422 = dma.hbm_to_vmem [thread:$0]  (!%p1845_p11), %s2402_s1, 2048, %s1838_s28, [#allocation6], %s2408_s16, %s2408_s16, %s1754_s17  }
  0x2a   : > { %s1561_s8 = scalar_lea.hbm %s2404_s3, 2048 }
  0x2b   : > { %p1562_p1 = scmp.ne.s32.totalorder %s2404_s3, %s1561_s8  ;;  %p1568_p10 = scmp.lt.u32.totalorder %s1561_s8, %s2404_s3 }
  0x2d   : > { %p1564_p2 = pnand %p1562_p1, %p1859_p13 }
  0x2f   : > { %p1565_p6 = pneg %p1564_p2 }
  0x31   : > { %p1570_p3 = pnand %p1568_p10, %p1565_p6 }
  0x33   : > { %1573 = shalt.err (!%p1570_p3)
}
  0x34   : > { %s1574_s28 = scalar_lea.vmem %s1849_s6, 2048  ;;  %p1582_p12 = scmp.lt.s32.totalorder %s1849_s6, %s1849_s6 }
  0x35   : > { %p1575_p5 = scmp.ne.s32.totalorder %s1849_s6, %s1574_s28  ;;  %p1583_p0 = scmp.lt.s32.totalorder %s1574_s28, %s1574_s28 }
  0x37   : > { %p1577_p7 = pnand %p1575_p5, %p1859_p13  ;;  %p1584_p1 = por %p1583_p0, %p1582_p12 }
  0x39   : > { %p1578_p9 = pneg %p1577_p7 }
  0x3b   : > { %p1585_p2 = pnand %p1584_p1, %p1578_p9 }
  0x3d   : > { %1588 = shalt.err (!%p1585_p2)
}
  0x3e   : > { %s1755_s14 = smov 64   ;;  %s1756_s15 = smov 4  }
  0x3f   : > { %1428 = dma.hbm_to_vmem [thread:$0]  (!%p1845_p11), %s2404_s3, 2048, %s1849_s6, [#allocation9], %s1755_s14, %s1755_s14, %s1756_s15  }
  0x40   : > { %s1757_s30 = smov [#allocation7]   ;;  %s1758_s8 = smov [#allocation10]  }
  0x41   : > { %s190_s7 = sshll.u32 %s1757_s30, 4  ;;  %s214_s9 = sshll.u32 %s1758_s8, 4  ;;  %s191_s7 = int_to_ptr.vmem [resolvable:$true] %s190_s7  ;;  %s1906_s9 = int_to_ptr.vmem [resolvable:$true] %s214_s9 }
  0x42   : > { %s1589_s13 = scalar_lea.hbm %s2403_s2, 32 }
  0x43   : > { %p1590_p6 = scmp.ne.s32.totalorder %s2403_s2, %s1589_s13  ;;  %p1596_p5 = scmp.lt.u32.totalorder %s1589_s13, %s2403_s2 }
  0x45   : > { %p1592_p10 = pnand %p1590_p6, %p1859_p13 }
  0x47   : > { %p1593_p3 = pneg %p1592_p10 }
  0x49   : > { %p1598_p7 = pnand %p1596_p5, %p1593_p3 }
  0x4b   : > { %1601 = shalt.err (!%p1598_p7)
}
  0x4c   : > { %s1602_s14 = scalar_lea.vmem %s191_s7, 32  ;;  %p1610_p1 = scmp.lt.s32.totalorder %s191_s7, %s191_s7 }
  0x4d   : > { %p1603_p9 = scmp.ne.s32.totalorder %s191_s7, %s1602_s14  ;;  %p1611_p2 = scmp.lt.s32.totalorder %s1602_s14, %s1602_s14 }
  0x4f   : > { %p1605_p12 = pnand %p1603_p9, %p1859_p13  ;;  %p1612_p4 = por %p1611_p2, %p1610_p1 }
  0x51   : > { %p1606_p0 = pneg %p1605_p12 }
  0x53   : > { %p1613_p8 = pnand %p1612_p4, %p1606_p0 }
  0x55   : > { %1616 = shalt.err (!%p1613_p8)
}
  0x56   : > { %1425 = dma.hbm_to_vmem [thread:$0]  (!%p1845_p11), %s2403_s2, 32, %s191_s7, [#allocation6]  }
  0x57   : > { %s1617_s8 = scalar_lea.hbm %s2405_s4, 16 }
  0x58   : > { %p1618_p6 = scmp.ne.s32.totalorder %s2405_s4, %s1617_s8  ;;  %p1624_p4 = scmp.lt.u32.totalorder %s1617_s8, %s2405_s4 }
  0x5a   : > { %p1620_p10 = pnand %p1618_p6, %p1859_p13 }
  0x5c   : > { %p1621_p3 = pneg %p1620_p10 }
  0x5e   : > { %p1626_p8 = pnand %p1624_p4, %p1621_p3 }
  0x60   : > { %1629 = shalt.err (!%p1626_p8)
}
  0x61   : > { %s1630_s7 = scalar_lea.vmem %s1906_s9, 16  ;;  %s1637_s23 = scalar_lea.vmem %s1906_s9, 32 }
  0x62   : > { %p1631_p5 = scmp.ne.s32.totalorder %s1906_s9, %s1630_s7  ;;  %p1638_p12 = scmp.lt.s32.totalorder %s1906_s9, %s1906_s9 }
  0x63   : > { %p1639_p0 = scmp.lt.s32.totalorder %s1637_s23, %s1630_s7 }
  0x64   : > { %p1633_p7 = pnand %p1631_p5, %p1859_p13 }
  0x65   : > { %p1640_p1 = por %p1639_p0, %p1638_p12 }
  0x66   : > { %p1634_p9 = pneg %p1633_p7 }
  0x68   : > { %p1641_p2 = pnand %p1640_p1, %p1634_p9 }
  0x6a   : > { %1644 = shalt.err (!%p1641_p2)
}
  0x6b   : > { %1431 = dma.hbm_to_vmem [thread:$0]  (!%p1845_p11), %s2405_s4, 16, %s1906_s9, [#allocation9]  }
  0x6c   : > { %s1951_s12 = sadd.s32 1, %s1749_s21   ;;  %s30_s16 = sadd.s32 1, %s1745_s20 }
  0x6d   : > { %s27_s29 = ssub.s32 %s1749_s21, %s1951_s12  ;;  %p37_p6 = scmp.ne.s32.totalorder %s1745_s20, %s1741_s19 }
  0x6e   : > { %p28_p13 = scmp.eq.s32.totalorder %s27_s29, 0  ;;  %p38_p10 = scmp.eq.s32.totalorder %s1749_s21, 0 }
  0x6f   : > { %p2416_p4 = scmp.eq.s32.totalorder %s1815_s22, 1  ;;  %p1444_p5 = scmp.lt.s32.totalorder %s1749_s21, 2 }
  0x70   : > { %s1960_s15 = scalar_select %p28_p13, %s1745_s20, %s30_s16  }
  0x71   : > { %p39_p3 = por %p38_p10, %p37_p6  ;;  %p1964_p8 = por %p2416_p4, %p37_p6 }
  0x72   : > { %s225_s30 = sand.u32 1, %s1745_s20   ;;  %s1285_s9 = sshll.u32 %s1749_s21, 12 }
  0x73   : > { %s1237_s8 = sshll.u32 %s225_s30, 8  ;;  %s1974_s13 = scalar_lea.hbm %s2401_s0, %s1285_s9 }
  0x74   : > { %s229_s28 = scalar_lea.vmem [#allocation2], %s1237_s8  ;;  %p1978_p11 = pnand %p1444_p5, %p39_p3 }
  0x75   : > { %s236_s7 = sshll.u32 %s229_s28, 4  ;;  %s1982_s6 = scalar_lea.sflag [#allocation3], %s225_s30  ;;  %s1976_s7 = int_to_ptr.vmem [resolvable:$true] %s236_s7 }
  0x76   : > { %s1645_s14 = scalar_lea.hbm %s1974_s13, 4096  ;;  %p1647_p9 = pneg %p1978_p11 }
  0x77   : > { %p1646_p7 = scmp.ne.s32.totalorder %s1974_s13, %s1645_s14  ;;  %s1650_s8 = scalar_lea.hbm %s2401_s0, 8192 }
  0x78   : > { %p1651_p1 = scmp.lt.u32.totalorder %s1974_s13, %s2401_s0  ;;  %p1652_p2 = scmp.lt.u32.totalorder %s1650_s8, %s1645_s14 }
  0x79   : > { %p1648_p12 = pnand %p1647_p9, %p1646_p7  ;;  %p1654_p6 = scmp.lt.u32.totalorder %s1645_s14, %s1974_s13 }
  0x7a   : > { %p1653_p13 = por %p1652_p2, %p1651_p1 }
  0x7b   : > { %p1649_p0 = pneg %p1648_p12 }
  0x7c   : > { %p1655_p10 = por %p1654_p6, %p1653_p13 }
  0x7e   : > { %p1656_p3 = pnand %p1655_p10, %p1649_p0 }
  0x80   : > { %1659 = shalt.err (!%p1656_p3)
}
  0x81   : > { %s1660_s30 = scalar_lea.vmem %s1976_s7, 4096  ;;  %s1759_s11 = smov [#allocation2]  }
  0x82   : > { %p1661_p4 = scmp.ne.s32.totalorder %s1976_s7, %s1660_s30  ;;  %s1665_s28 = sshll.u32 %s1759_s11, 4  ;;  %s1666_s28 = int_to_ptr.vmem [resolvable:$false] %s1665_s28 }
  0x83   : > { %s1667_s29 = scalar_lea.vmem %s1666_s28, 8192  ;;  %p1668_p12 = scmp.lt.s32.totalorder %s1976_s7, %s1666_s28 }
  0x84   : > { %p1663_p5 = pnand %p1661_p4, %p1647_p9  ;;  %p1669_p1 = scmp.lt.s32.totalorder %s1667_s29, %s1660_s30 }
  0x86   : > { %p1664_p7 = pneg %p1663_p5  ;;  %p1670_p2 = por %p1669_p1, %p1668_p12 }
  0x88   : > { %p1671_p13 = pnand %p1670_p2, %p1664_p7 }
  0x8a   : > { %1674 = shalt.err (!%p1671_p13)
}
  0x8b   : > { %s2419_s14 = smov 128   ;;  %p2420_p9 = scmp.ne.s32.totalorder %s2413_s26, 0 }
  0x8c   : > { %1435 = dma.hbm_to_vmem [thread:$0]  (!%p1978_p11), %s1974_s13, 4096, %s1976_s7, %s1982_s6, %s2419_s14, %s2419_s14, %s1754_s17  }
  0x8d   : > { %248 = sbr.rel (%p2420_p9) target bundleno = 767 (0x2ff), region = 40  ;;  %s2016_s16 = sand.u32 (!%p2420_p9), 1, %s1741_s19  }
  0x8e   : > { %s1241_s8 = sshll.u32 (!%p2420_p9), %s2016_s16, 8  ;;  %s251_s9 = scalar_lea.sflag (!%p2420_p9), [#allocation3], %s2016_s16 }
  0x8f   : > { %s2022_s23 = scalar_lea.vmem (!%p2420_p9), [#allocation2], %s1241_s8  ;;  %p2421_p0 = scmp.ne.s32.totalorder (!%p2420_p9), %s2411_s24, 0 }
  0x94   : > { %1720 = dma.done.wait (%p2421_p0), %s251_s9, 4096  }
  0x95   : > { %1722 = vsyncadd (%p2421_p0), %s251_s9, 4294963200  ;;  %p2422_p11 = scmp.eq.s32.totalorder %s1815_s22, 0 }
  0x97   : > { %1724 = dma.done.wait (%p2422_p11), [#allocation6], 2080   ;;  %p2423_p6 = pmov %p2422_p11 }
  0x99   : > { %1726 = vsyncadd (%p2423_p6), [#allocation6], 4294965216  ;;  %p2424_p10 = pmov %p2423_p6 }
  0x9a   : > { %p2425_p3 = pmov %p2423_p6 }
  0x9b   : > { %1728 = dma.done.wait (%p2424_p10), [#allocation9], 2064  }
  0x9c   : > { %1730 = vsyncadd (%p2425_p3), [#allocation9], 4294965232  ;;  %v1760_v0 = vmov 0   ;;  %v1493_v1 = vld [vmem:[#allocation5 + $0x4] ss:$8 sps:$4 sm:$0xff]   ;;  %v1521_v24 = vld [vmem:[#allocation8 + $0x50] sm:$0xff]  }
  0x9d   : > { %488 = vmatprep.mubr.bf16.mxu0 %v1760_v0  ;;  %v1495_v2 = vld [vmem:[#allocation5] ss:$8 sps:$4 sm:$0xff]   ;;  %456 = vmatprep.subr.bf16.mxu0 %v1493_v1  ;;  %v1496_v3 = vld [vmem:[#allocation5 + $0x14] ss:$8 sps:$4 sm:$0xff]   ;;  %v1498_v4 = vld [vmem:[#allocation5 + $0x10] ss:$8 sps:$4 sm:$0xff]  }
  0x9e   : > { %457 = vmatpush1.bf16.msra.mxu0 %v1495_v2  ;;  %v1499_v5 = vld [vmem:[#allocation5 + $0x24] ss:$8 sps:$4 sm:$0xff]   ;;  %v1501_v6 = vld [vmem:[#allocation5 + $0x20] ss:$8 sps:$4 sm:$0xff]   ;;  %v1502_v7 = vld [vmem:[#allocation5 + $0x34] ss:$8 sps:$4 sm:$0xff]  }
  0x9f   : > { %458 = vmatprep.subr.bf16.mxu0 %v1496_v3  ;;  %v1504_v8 = vld [vmem:[#allocation5 + $0x30] ss:$8 sps:$4 sm:$0xff]   ;;  %v1505_v9 = vld [vmem:[#allocation5 + $0x44] ss:$8 sps:$4 sm:$0xff]   ;;  %v1507_v10 = vld [vmem:[#allocation5 + $0x40] ss:$8 sps:$4 sm:$0xff]  }
  0xa0   : > { %v1508_v11 = vld [vmem:[#allocation5 + $0x54] ss:$8 sps:$4 sm:$0xff]   ;;  %v1510_v12 = vld [vmem:[#allocation5 + $0x50] ss:$8 sps:$4 sm:$0xff]   ;;  %v1511_v13 = vld [vmem:[#allocation5 + $0x64] ss:$8 sps:$4 sm:$0xff]  }
  0xa1   : > { %v1513_v14 = vld [vmem:[#allocation5 + $0x60] ss:$8 sps:$4 sm:$0xff]   ;;  %v1514_v15 = vld [vmem:[#allocation5 + $0x74] ss:$8 sps:$4 sm:$0xff]   ;;  %v1516_v19 = vld [vmem:[#allocation5 + $0x70] ss:$8 sps:$4 sm:$0xff]  }
  0xa2   : > { %459 = vmatpush1.bf16.msra.mxu0 %v1498_v4  ;;  %v1517_v16 = vld [vmem:[#allocation8 + $0x40] sm:$0xff]   ;;  %v1519_v18 = vld [vmem:[#allocation8 + $0x48] sm:$0xff]   ;;  %v1522_v25 = vld [vmem:[#allocation8 + $0x10] sm:$0xff]   ;;  %s2255_s24 = scalar_lea.vmem [#allocation11], %s1241_s8  ;;  %s1286_s26 = sshll.u32 %s1815_s22, 12 }
  0xa3   : > { %460 = vmatprep.subr.bf16.mxu0 %v1499_v5  ;;  %v1518_v17 = vld [vmem:[#allocation8] sm:$0xff]   ;;  %1287 = vmatprep.subr.bf16.mxu1 %v1517_v16  ;;  %v1520_v22 = vld [vmem:[#allocation8 + $0x8] sm:$0xff]   ;;  %v1523_v26 = vld [vmem:[#allocation8 + $0x58] sm:$0xff]   ;;  %s1119_s17 = sshll.u32 %s2255_s24, 4  ;;  %s2352_s6 = scalar_lea.hbm %s2406_s5, %s1286_s26  ;;  %s2354_s17 = int_to_ptr.vmem [resolvable:$true] %s1119_s17 }
  0xa4   : > { %v2038_v20 = vld [vmem:[%s2022_s23] sm:$0xff]  ;;  %v2041_v21 = vld [vmem:[%s2022_s23 + $0x8] sm:$0xff]  ;;  %1288 = vmatpush3.bf16.msra.mxu1 %v1518_v17  ;;  %v2046_v27 = vld [vmem:[%s2022_s23 + $0x10] sm:$0xff]  ;;  %s1106_s22 = scalar_lea.sflag [#allocation4], %s2016_s16  ;;  %s1675_s10 = scalar_lea.vmem %s2354_s17, 4096 }
  0xa5   : > { %v332_v23 = vpack.c.bf16 %v2041_v21, %v2038_v20  ;;  %1289 = vmatprep.subr.bf16.mxu1 %v1519_v18  ;;  %v2049_v28 = vld [vmem:[%s2022_s23 + $0x18] sm:$0xff]  ;;  %v1525_v31 = vld [vmem:[#allocation8 + $0x60] sm:$0xff]   ;;  %v1527_v33 = vld [vmem:[#allocation8 + $0x68] sm:$0xff]   ;;  %v366_v18 = vlaneseq  ;;  %p1676_p4 = scmp.ne.s32.totalorder %s2354_s17, %s1675_s10  ;;  %s1761_s30 = smov [#allocation11]  }
  0xa6   : > { %461 = vmatpush1.bf16.msra.mxu0 %v1501_v6  ;;  %v1524_v29 = vld [vmem:[#allocation8 + $0x18] sm:$0xff]   ;;  %v333_v30 = vpack.c.bf16 %v2049_v28, %v2046_v27  ;;  %v1526_v32 = vld [vmem:[#allocation8 + $0x20] sm:$0xff]   ;;  %v2065_v37 = vld [vmem:[%s2022_s23 + $0x30] sm:$0xff]  ;;  %s1679_s11 = sshll.u32 %s1761_s30, 4  ;;  %s1680_s11 = int_to_ptr.vmem [resolvable:$false] %s1679_s11 }
  0xa7   : > { %462 = vmatprep.subr.bf16.mxu0 %v1502_v7  ;;  %v2056_v34 = vld [vmem:[%s2022_s23 + $0x20] sm:$0xff]  ;;  %v2059_v35 = vld [vmem:[%s2022_s23 + $0x28] sm:$0xff]  ;;  %v2068_v38 = vld [vmem:[%s2022_s23 + $0x38] sm:$0xff]  ;;  %p1677_p5 = pnand %p1676_p4, %p1964_p8  ;;  %s1681_s28 = scalar_lea.vmem %s1680_s11, 8192 }
  0xa8   : > { %1290 = vmatpush3.bf16.msra.mxu1 %v1520_v22  ;;  %v334_v36 = vpack.c.bf16 %v2059_v35, %v2056_v34  ;;  %v335_v39 = vpack.c.bf16 %v2068_v38, %v2065_v37  ;;  %v2074_v40 = vld [vmem:[%s2022_s23 + $0x40] sm:$0xff]  ;;  %v2077_v41 = vld [vmem:[%s2022_s23 + $0x48] sm:$0xff]  ;;  %v2083_v43 = vld [vmem:[%s2022_s23 + $0x50] sm:$0xff]  ;;  %p1682_p12 = scmp.lt.s32.totalorder %s2354_s17, %s1680_s11  ;;  %p1683_p1 = scmp.lt.s32.totalorder %s1681_s28, %s1675_s10 }
  0xa9   : > { %1291 = vmatprep.subr.bf16.mxu1 %v1521_v24  ;;  %v336_v42 = vpack.c.bf16 %v2077_v41, %v2074_v40  ;;  %v2086_v44 = vld [vmem:[%s2022_s23 + $0x58] sm:$0xff]  ;;  %v2092_v46 = vld [vmem:[%s2022_s23 + $0x60] sm:$0xff]  ;;  %v2095_v47 = vld [vmem:[%s2022_s23 + $0x68] sm:$0xff]  ;;  %p1678_p7 = pneg %p1677_p5 }
  0xaa   : > { %463 = vmatpush1.bf16.msra.mxu0 %v1504_v8  ;;  %v337_v45 = vpack.c.bf16 %v2086_v44, %v2083_v43  ;;  %v338_v48 = vpack.c.bf16 %v2095_v47, %v2092_v46  ;;  %v2101_v49 = vld [vmem:[%s2022_s23 + $0x70] sm:$0xff]  ;;  %v2104_v50 = vld [vmem:[%s2022_s23 + $0x78] sm:$0xff]  ;;  %v2110_v52 = vld [vmem:[%s2022_s23 + $0x80] sm:$0xff]  ;;  %p1684_p2 = por %p1683_p1, %p1682_p12 }
  0xab   : > { %464 = vmatprep.subr.bf16.mxu0 %v1505_v9  ;;  %v339_v51 = vpack.c.bf16 %v2104_v50, %v2101_v49  ;;  %v2113_v53 = vld [vmem:[%s2022_s23 + $0x88] sm:$0xff]  ;;  %v2119_v55 = vld [vmem:[%s2022_s23 + $0x90] sm:$0xff]  ;;  %v2122_v56 = vld [vmem:[%s2022_s23 + $0x98] sm:$0xff] }
  0xac   : > { %1292 = vmatpush3.bf16.msra.mxu1 %v1522_v25  ;;  %v340_v54 = vpack.c.bf16 %v2113_v53, %v2110_v52  ;;  %v341_v57 = vpack.c.bf16 %v2122_v56, %v2119_v55  ;;  %v2128_v58 = vld [vmem:[%s2022_s23 + $0xa0] sm:$0xff]  ;;  %v2131_v59 = vld [vmem:[%s2022_s23 + $0xa8] sm:$0xff]  ;;  %v2137_v61 = vld [vmem:[%s2022_s23 + $0xb0] sm:$0xff]  ;;  %p1685_p13 = pnand %p1684_p2, %p1678_p7 }
  0xad   : > { %1293 = vmatprep.subr.bf16.mxu1 %v1523_v26  ;;  %v342_v60 = vpack.c.bf16 %v2131_v59, %v2128_v58  ;;  %v2140_v62 = vld [vmem:[%s2022_s23 + $0xb8] sm:$0xff]  ;;  %v1528_v63 = vld [vmem:[#allocation8 + $0x28] sm:$0xff]   ;;  %v2146_v5 = vld [vmem:[%s2022_s23 + $0xc0] sm:$0xff] }
  0xae   : > { %465 = vmatpush1.bf16.msra.mxu0 %v1507_v10  ;;  %v343_v1 = vpack.c.bf16 %v2140_v62, %v2137_v61  ;;  %v1529_v2 = vld [vmem:[#allocation8 + $0x70] sm:$0xff]   ;;  %v1531_v4 = vld [vmem:[#allocation8 + $0x78] sm:$0xff]   ;;  %v2149_v6 = vld [vmem:[%s2022_s23 + $0xc8] sm:$0xff] }
  0xaf   : > { %466 = vmatprep.subr.bf16.mxu0 %v1508_v11  ;;  %v1530_v3 = vld [vmem:[#allocation8 + $0x30] sm:$0xff]   ;;  %v1532_v7 = vld [vmem:[#allocation8 + $0x38] sm:$0xff]   ;;  %v344_v8 = vpack.c.bf16 %v2149_v6, %v2146_v5 }
  0xb0   : > { %1294 = vmatpush3.bf16.msra.mxu1 %v1524_v29  ;;  %v2155_v9 = vld [vmem:[%s2022_s23 + $0xd0] sm:$0xff]  ;;  %v2158_v10 = vld [vmem:[%s2022_s23 + $0xd8] sm:$0xff] }
  0xb1   : > { %1295 = vmatprep.subr.bf16.mxu1 %v1525_v31  ;;  %v345_v11 = vpack.c.bf16 %v2158_v10, %v2155_v9  ;;  %v2176_v16 = vld [vmem:[%s2022_s23 + $0xf8] sm:$0xff] }
  0xb2   : > { %467 = vmatpush1.bf16.msra.mxu0 %v1510_v12  ;;  %v2164_v12 = vld [vmem:[%s2022_s23 + $0xe0] sm:$0xff] }
  0xb3   : > { %468 = vmatprep.subr.bf16.mxu0 %v1511_v13  ;;  %v2167_v13 = vld [vmem:[%s2022_s23 + $0xe8] sm:$0xff] }
  0xb4   : > { %1296 = vmatpush3.bf16.msra.mxu1 %v1526_v32 }
  0xb5   : > { %1297 = vmatprep.subr.bf16.mxu1 %v1527_v33 }
  0xb6   : > { %469 = vmatpush1.bf16.msra.mxu0 %v1513_v14  ;;  %v346_v14 = vpack.c.bf16 %v2167_v13, %v2164_v12 }
  0xb7   : > { %470 = vmatprep.subr.bf16.mxu0 %v1514_v15  ;;  %v2173_v15 = vld [vmem:[%s2022_s23 + $0xf0] sm:$0xff] }
  0xb8   : > { %1298 = vmatpush3.bf16.msra.mxu1 %v1528_v63  ;;  %v347_v17 = vpack.c.bf16 %v2176_v16, %v2173_v15 }
  0xb9   : > { %1299 = vmatprep.subr.bf16.mxu1 %v1529_v2 }
  0xba   : > { %471 = vmatpush1.bf16.msra.mxu0 %v1516_v19  ;;  %v367_v19 = vshrl.u32 %v366_v18, 7 }
  0xbc   : > { %1300 = vmatpush3.bf16.msra.mxu1 %v1530_v3  ;;  %v368_v22 = vsub.s32 0, %v367_v19  ;;  %v372_v24 = vsub.s32 1, %v367_v19 }
  0xbd   : > { %489 = vmatmul.mubr.bf16.vlgmr.msra.gmra.mrb[0].mxu0 %v332_v23  ;;  %1301 = vmatprep.subr.bf16.mxu1 %v1531_v4  ;;  %v364_v23 = vld [vmem:[#allocation7] sm:$0x3] }
  0xbe   : > { %498 = vmatprep.mubr.bf16.mxu0 %v1760_v0  ;;  %v2180_v25 = vrot.slane %v364_v23, %v368_v22  ;;  %v2182_v26 = vrot.slane %v364_v23, %v372_v24 }
  0xc0   : > { %1302 = vmatpush3.bf16.msra.mxu1 %v1532_v7 }
  0xc5   : > { %499 = vmatmul.mubr.bf16.gmra.mrb[4].mxu0 %v333_v30 }
  0xc6   : > { %508 = vmatprep.mubr.bf16.mxu0 %v1760_v0 }
  0xcd   : > { %509 = vmatmul.mubr.bf16.gmra.mrb[8].mxu0 %v334_v36 }
  0xce   : > { %518 = vmatprep.mubr.bf16.mxu0 %v1760_v0 }
  0xd5   : > { %519 = vmatmul.mubr.bf16.gmra.mrb[12].mxu0 %v335_v39 }
  0xd6   : > { %528 = vmatprep.mubr.bf16.mxu0 %v1760_v0 }
  0xdd   : > { %529 = vmatmul.mubr.bf16.gmra.mrb[16].mxu0 %v336_v42 }
  0xde   : > { %538 = vmatprep.mubr.bf16.mxu0 %v1760_v0 }
  0xe5   : > { %539 = vmatmul.mubr.bf16.gmra.mrb[20].mxu0 %v337_v45 }
  0xe6   : > { %548 = vmatprep.mubr.bf16.mxu0 %v1760_v0 }
  0xed   : > { %549 = vmatmul.mubr.bf16.gmra.mrb[24].mxu0 %v338_v48 }
  0xee   : > { %558 = vmatprep.mubr.bf16.mxu0 %v1760_v0 }
  0xf5   : > { %559 = vmatmul.mubr.bf16.gmra.mrb[28].mxu0 %v339_v51 }
  0xf6   : > { %568 = vmatprep.mubr.bf16.mxu0 %v1760_v0 }
  0xfd   : > { %569 = vmatmul.mubr.bf16.gmra.mrb[32].mxu0 %v340_v54 }
  0xfe   : > { %578 = vmatprep.mubr.bf16.mxu0 %v1760_v0 }
 0x105   : > { %579 = vmatmul.mubr.bf16.gmra.mrb[36].mxu0 %v341_v57 }
 0x106   : > { %588 = vmatprep.mubr.bf16.mxu0 %v1760_v0 }
 0x10d   : > { %589 = vmatmul.mubr.bf16.gmra.mrb[40].mxu0 %v342_v60 }
 0x10e   : > { %598 = vmatprep.mubr.bf16.mxu0 %v1760_v0 }
 0x115   : > { %599 = vmatmul.mubr.bf16.gmra.mrb[44].mxu0 %v343_v1 }
 0x116   : > { %608 = vmatprep.mubr.bf16.mxu0 %v1760_v0 }
 0x11d   : > { %609 = vmatmul.mubr.bf16.gmra.mrb[48].mxu0 %v344_v8 }
 0x11e   : > { %618 = vmatprep.mubr.bf16.mxu0 %v1760_v0 }
 0x125   : > { %619 = vmatmul.mubr.bf16.gmra.mrb[52].mxu0 %v345_v11 }
 0x126   : > { %628 = vmatprep.mubr.bf16.mxu0 %v1760_v0 }
 0x12d   : > { %629 = vmatmul.mubr.bf16.gmra.mrb[56].mxu0 %v346_v14 }
 0x12e   : > { %638 = vmatprep.mubr.bf16.mxu0 %v1760_v0 }
 0x135   : > { %639 = vmatmul.mubr.bf16.gmra.mrb[60].mxu0 %v347_v17 }
 0x190   : > { %v490_v29 = vpop.f32.mrb[0].mxu0 }
 0x191   : > { %v491_v0 = vadd.f32 %v490_v29, %v2180_v25  ;;  %v492_v30 = vpop.f32.mrb[1].mxu0 }
 0x192   : > { %v493_v31 = vadd.f32 %v492_v30, %v2182_v26  ;;  %v494_v32 = vpop.f32.mrb[2].mxu0 }
 0x193   : > { %v495_v33 = vadd.f32 %v494_v32, %v2180_v25  ;;  %v496_v36 = vpop.f32.mrb[3].mxu0  ;;  %v649_v42 = vmax.f32 %v491_v0, 0.0 }
 0x194   : > { %v497_v39 = vadd.f32 %v496_v36, %v2182_v26  ;;  %v650_v48 = vmax.f32 %v493_v31, 0.0 }
 0x195   : > { %v651_v45 = vmax.f32 %v495_v33, 0.0 }
 0x196   : > { %v652_v51 = vmax.f32 %v497_v39, 0.0 }
 0x197   : > { %v713_v54 = vpack.c.bf16 %v651_v45, %v649_v42 }
 0x198   : > { %v500_v57 = vpop.f32.mrb[4].mxu0  ;;  %v714_v60 = vpack.c.bf16 %v652_v51, %v650_v48 }
 0x199   : > { %v501_v63 = vadd.f32 %v500_v57, %v2180_v25  ;;  %v502_v1 = vpop.f32.mrb[5].mxu0 }
 0x19a   : > { %v503_v2 = vadd.f32 %v502_v1, %v2182_v26  ;;  %v504_v3 = vpop.f32.mrb[6].mxu0  ;;  %912 = vmatprep.mubr.bf16.mxu1 %v714_v60 }
 0x19b   : > { %v505_v4 = vadd.f32 %v504_v3, %v2180_v25  ;;  %v506_v7 = vpop.f32.mrb[7].mxu0  ;;  %913 = vmatmul.mubr.bf16.vlgmr.msra.gmra.mrb[0].mxu1 %v713_v54  ;;  %v653_v11 = vmax.f32 %v501_v63, 0.0 }
 0x19c   : > { %v507_v8 = vadd.f32 %v506_v7, %v2182_v26  ;;  %v654_v17 = vmax.f32 %v503_v2, 0.0 }
 0x19d   : > { %v655_v14 = vmax.f32 %v505_v4, 0.0 }
 0x19e   : > { %v656_v18 = vmax.f32 %v507_v8, 0.0 }
 0x19f   : > { %v715_v19 = vpack.c.bf16 %v655_v14, %v653_v11 }
 0x1a0   : > { %v716_v22 = vpack.c.bf16 %v656_v18, %v654_v17  ;;  %v510_v23 = vpop.f32.mrb[8].mxu0 }
 0x1a1   : > { %v511_v24 = vadd.f32 %v510_v23, %v2180_v25  ;;  %v512_v29 = vpop.f32.mrb[9].mxu0 }
 0x1a2   : > { %v513_v0 = vadd.f32 %v512_v29, %v2182_v26  ;;  %v514_v30 = vpop.f32.mrb[10].mxu0  ;;  %920 = vmatprep.mubr.bf16.mxu1 %v716_v22 }
 0x1a3   : > { %v515_v31 = vadd.f32 %v514_v30, %v2180_v25  ;;  %v516_v32 = vpop.f32.mrb[11].mxu0  ;;  %921 = vmatmul.mubr.bf16.gmra.mrb[4].mxu1 %v715_v19  ;;  %v657_v36 = vmax.f32 %v511_v24, 0.0 }
 0x1a4   : > { %v517_v33 = vadd.f32 %v516_v32, %v2182_v26  ;;  %v658_v42 = vmax.f32 %v513_v0, 0.0 }
 0x1a5   : > { %v659_v39 = vmax.f32 %v515_v31, 0.0 }
 0x1a6   : > { %v660_v45 = vmax.f32 %v517_v33, 0.0 }
 0x1a7   : > { %v717_v48 = vpack.c.bf16 %v659_v39, %v657_v36 }
 0x1a8   : > { %v718_v51 = vpack.c.bf16 %v660_v45, %v658_v42  ;;  %v520_v54 = vpop.f32.mrb[12].mxu0 }
 0x1a9   : > { %v521_v57 = vadd.f32 %v520_v54, %v2180_v25  ;;  %v522_v60 = vpop.f32.mrb[13].mxu0 }
 0x1aa   : > { %v523_v63 = vadd.f32 %v522_v60, %v2182_v26  ;;  %v524_v1 = vpop.f32.mrb[14].mxu0  ;;  %928 = vmatprep.mubr.bf16.mxu1 %v718_v51 }
 0x1ab   : > { %v525_v2 = vadd.f32 %v524_v1, %v2180_v25  ;;  %v526_v3 = vpop.f32.mrb[15].mxu0  ;;  %929 = vmatmul.mubr.bf16.gmra.mrb[8].mxu1 %v717_v48  ;;  %v661_v7 = vmax.f32 %v521_v57, 0.0 }
 0x1ac   : > { %v527_v4 = vadd.f32 %v526_v3, %v2182_v26  ;;  %v662_v11 = vmax.f32 %v523_v63, 0.0 }
 0x1ad   : > { %v663_v8 = vmax.f32 %v525_v2, 0.0 }
 0x1ae   : > { %v664_v14 = vmax.f32 %v527_v4, 0.0 }
 0x1af   : > { %v719_v17 = vpack.c.bf16 %v663_v8, %v661_v7 }
 0x1b0   : > { %v720_v18 = vpack.c.bf16 %v664_v14, %v662_v11  ;;  %v530_v19 = vpop.f32.mrb[16].mxu0 }
 0x1b1   : > { %v531_v22 = vadd.f32 %v530_v19, %v2180_v25  ;;  %v532_v23 = vpop.f32.mrb[17].mxu0 }
 0x1b2   : > { %v533_v24 = vadd.f32 %v532_v23, %v2182_v26  ;;  %v534_v29 = vpop.f32.mrb[18].mxu0  ;;  %936 = vmatprep.mubr.bf16.mxu1 %v720_v18 }
 0x1b3   : > { %v535_v0 = vadd.f32 %v534_v29, %v2180_v25  ;;  %v536_v30 = vpop.f32.mrb[19].mxu0  ;;  %937 = vmatmul.mubr.bf16.gmra.mrb[12].mxu1 %v719_v17  ;;  %v665_v32 = vmax.f32 %v531_v22, 0.0 }
 0x1b4   : > { %v537_v31 = vadd.f32 %v536_v30, %v2182_v26  ;;  %v666_v36 = vmax.f32 %v533_v24, 0.0 }
 0x1b5   : > { %v667_v33 = vmax.f32 %v535_v0, 0.0 }
 0x1b6   : > { %v668_v39 = vmax.f32 %v537_v31, 0.0 }
 0x1b7   : > { %v721_v42 = vpack.c.bf16 %v667_v33, %v665_v32 }
 0x1b8   : > { %v722_v45 = vpack.c.bf16 %v668_v39, %v666_v36  ;;  %v540_v48 = vpop.f32.mrb[20].mxu0 }
 0x1b9   : > { %v541_v51 = vadd.f32 %v540_v48, %v2180_v25  ;;  %v542_v54 = vpop.f32.mrb[21].mxu0 }
 0x1ba   : > { %v543_v57 = vadd.f32 %v542_v54, %v2182_v26  ;;  %v544_v60 = vpop.f32.mrb[22].mxu0  ;;  %944 = vmatprep.mubr.bf16.mxu1 %v722_v45 }
 0x1bb   : > { %v545_v63 = vadd.f32 %v544_v60, %v2180_v25  ;;  %v546_v1 = vpop.f32.mrb[23].mxu0  ;;  %945 = vmatmul.mubr.bf16.gmra.mrb[16].mxu1 %v721_v42  ;;  %v669_v3 = vmax.f32 %v541_v51, 0.0 }
 0x1bc   : > { %v547_v2 = vadd.f32 %v546_v1, %v2182_v26  ;;  %v670_v7 = vmax.f32 %v543_v57, 0.0 }
 0x1bd   : > { %v671_v4 = vmax.f32 %v545_v63, 0.0 }
 0x1be   : > { %v672_v8 = vmax.f32 %v547_v2, 0.0 }
 0x1bf   : > { %v723_v11 = vpack.c.bf16 %v671_v4, %v669_v3 }
 0x1c0   : > { %v724_v14 = vpack.c.bf16 %v672_v8, %v670_v7  ;;  %v550_v17 = vpop.f32.mrb[24].mxu0 }
 0x1c1   : > { %v551_v18 = vadd.f32 %v550_v17, %v2180_v25  ;;  %v552_v19 = vpop.f32.mrb[25].mxu0 }
 0x1c2   : > { %v553_v22 = vadd.f32 %v552_v19, %v2182_v26  ;;  %v554_v23 = vpop.f32.mrb[26].mxu0  ;;  %952 = vmatprep.mubr.bf16.mxu1 %v724_v14 }
 0x1c3   : > { %v555_v24 = vadd.f32 %v554_v23, %v2180_v25  ;;  %v556_v29 = vpop.f32.mrb[27].mxu0  ;;  %953 = vmatmul.mubr.bf16.gmra.mrb[20].mxu1 %v723_v11  ;;  %v673_v30 = vmax.f32 %v551_v18, 0.0 }
 0x1c4   : > { %v557_v0 = vadd.f32 %v556_v29, %v2182_v26  ;;  %v674_v32 = vmax.f32 %v553_v22, 0.0 }
 0x1c5   : > { %v675_v31 = vmax.f32 %v555_v24, 0.0 }
 0x1c6   : > { %v676_v33 = vmax.f32 %v557_v0, 0.0 }
 0x1c7   : > { %v725_v36 = vpack.c.bf16 %v675_v31, %v673_v30 }
 0x1c8   : > { %v726_v39 = vpack.c.bf16 %v676_v33, %v674_v32  ;;  %v560_v42 = vpop.f32.mrb[28].mxu0 }
 0x1c9   : > { %v561_v45 = vadd.f32 %v560_v42, %v2180_v25  ;;  %v562_v48 = vpop.f32.mrb[29].mxu0 }
 0x1ca   : > { %v563_v51 = vadd.f32 %v562_v48, %v2182_v26  ;;  %v564_v54 = vpop.f32.mrb[30].mxu0  ;;  %960 = vmatprep.mubr.bf16.mxu1 %v726_v39 }
 0x1cb   : > { %v565_v57 = vadd.f32 %v564_v54, %v2180_v25  ;;  %v566_v60 = vpop.f32.mrb[31].mxu0  ;;  %961 = vmatmul.mubr.bf16.gmra.mrb[24].mxu1 %v725_v36  ;;  %v677_v1 = vmax.f32 %v561_v45, 0.0 }
 0x1cc   : > { %v567_v63 = vadd.f32 %v566_v60, %v2182_v26  ;;  %v678_v3 = vmax.f32 %v563_v51, 0.0 }
 0x1cd   : > { %v679_v2 = vmax.f32 %v565_v57, 0.0 }
 0x1ce   : > { %v680_v4 = vmax.f32 %v567_v63, 0.0 }
 0x1cf   : > { %v727_v7 = vpack.c.bf16 %v679_v2, %v677_v1 }
 0x1d0   : > { %v728_v8 = vpack.c.bf16 %v680_v4, %v678_v3  ;;  %v570_v11 = vpop.f32.mrb[32].mxu0 }
 0x1d1   : > { %v571_v14 = vadd.f32 %v570_v11, %v2180_v25  ;;  %v572_v17 = vpop.f32.mrb[33].mxu0 }
 0x1d2   : > { %v573_v18 = vadd.f32 %v572_v17, %v2182_v26  ;;  %v574_v19 = vpop.f32.mrb[34].mxu0  ;;  %968 = vmatprep.mubr.bf16.mxu1 %v728_v8 }
 0x1d3   : > { %v575_v22 = vadd.f32 %v574_v19, %v2180_v25  ;;  %v576_v23 = vpop.f32.mrb[35].mxu0  ;;  %969 = vmatmul.mubr.bf16.gmra.mrb[28].mxu1 %v727_v7  ;;  %v681_v29 = vmax.f32 %v571_v14, 0.0 }
 0x1d4   : > { %v577_v24 = vadd.f32 %v576_v23, %v2182_v26  ;;  %v682_v30 = vmax.f32 %v573_v18, 0.0 }
 0x1d5   : > { %v683_v0 = vmax.f32 %v575_v22, 0.0 }
 0x1d6   : > { %v684_v31 = vmax.f32 %v577_v24, 0.0 }
 0x1d7   : > { %v729_v32 = vpack.c.bf16 %v683_v0, %v681_v29 }
 0x1d8   : > { %v730_v33 = vpack.c.bf16 %v684_v31, %v682_v30  ;;  %v580_v36 = vpop.f32.mrb[36].mxu0 }
 0x1d9   : > { %v581_v39 = vadd.f32 %v580_v36, %v2180_v25  ;;  %v582_v42 = vpop.f32.mrb[37].mxu0 }
 0x1da   : > { %v583_v45 = vadd.f32 %v582_v42, %v2182_v26  ;;  %v584_v48 = vpop.f32.mrb[38].mxu0  ;;  %976 = vmatprep.mubr.bf16.mxu1 %v730_v33 }
 0x1db   : > { %v585_v51 = vadd.f32 %v584_v48, %v2180_v25  ;;  %v586_v54 = vpop.f32.mrb[39].mxu0  ;;  %977 = vmatmul.mubr.bf16.gmra.mrb[32].mxu1 %v729_v32  ;;  %v685_v60 = vmax.f32 %v581_v39, 0.0 }
 0x1dc   : > { %v587_v57 = vadd.f32 %v586_v54, %v2182_v26  ;;  %v686_v1 = vmax.f32 %v583_v45, 0.0 }
 0x1dd   : > { %v687_v63 = vmax.f32 %v585_v51, 0.0 }
 0x1de   : > { %v688_v2 = vmax.f32 %v587_v57, 0.0 }
 0x1df   : > { %v731_v3 = vpack.c.bf16 %v687_v63, %v685_v60 }
 0x1e0   : > { %v732_v4 = vpack.c.bf16 %v688_v2, %v686_v1  ;;  %v590_v7 = vpop.f32.mrb[40].mxu0 }
 0x1e1   : > { %v591_v8 = vadd.f32 %v590_v7, %v2180_v25  ;;  %v592_v11 = vpop.f32.mrb[41].mxu0 }
 0x1e2   : > { %v593_v14 = vadd.f32 %v592_v11, %v2182_v26  ;;  %v594_v17 = vpop.f32.mrb[42].mxu0  ;;  %984 = vmatprep.mubr.bf16.mxu1 %v732_v4 }
 0x1e3   : > { %v595_v18 = vadd.f32 %v594_v17, %v2180_v25  ;;  %v596_v19 = vpop.f32.mrb[43].mxu0  ;;  %985 = vmatmul.mubr.bf16.gmra.mrb[36].mxu1 %v731_v3  ;;  %v689_v23 = vmax.f32 %v591_v8, 0.0 }
 0x1e4   : > { %v597_v22 = vadd.f32 %v596_v19, %v2182_v26  ;;  %v690_v29 = vmax.f32 %v593_v14, 0.0 }
 0x1e5   : > { %v691_v24 = vmax.f32 %v595_v18, 0.0 }
 0x1e6   : > { %v692_v0 = vmax.f32 %v597_v22, 0.0 }
 0x1e7   : > { %v733_v30 = vpack.c.bf16 %v691_v24, %v689_v23 }
 0x1e8   : > { %v734_v31 = vpack.c.bf16 %v692_v0, %v690_v29  ;;  %v600_v32 = vpop.f32.mrb[44].mxu0 }
 0x1e9   : > { %v601_v33 = vadd.f32 %v600_v32, %v2180_v25  ;;  %v602_v36 = vpop.f32.mrb[45].mxu0 }
 0x1ea   : > { %v603_v39 = vadd.f32 %v602_v36, %v2182_v26  ;;  %v604_v42 = vpop.f32.mrb[46].mxu0  ;;  %992 = vmatprep.mubr.bf16.mxu1 %v734_v31 }
 0x1eb   : > { %v605_v45 = vadd.f32 %v604_v42, %v2180_v25  ;;  %v606_v48 = vpop.f32.mrb[47].mxu0  ;;  %993 = vmatmul.mubr.bf16.gmra.mrb[40].mxu1 %v733_v30  ;;  %v693_v54 = vmax.f32 %v601_v33, 0.0 }
 0x1ec   : > { %v607_v51 = vadd.f32 %v606_v48, %v2182_v26  ;;  %v694_v60 = vmax.f32 %v603_v39, 0.0 }
 0x1ed   : > { %v695_v57 = vmax.f32 %v605_v45, 0.0 }
 0x1ee   : > { %v696_v63 = vmax.f32 %v607_v51, 0.0 }
 0x1ef   : > { %v735_v1 = vpack.c.bf16 %v695_v57, %v693_v54 }
 0x1f0   : > { %v736_v2 = vpack.c.bf16 %v696_v63, %v694_v60  ;;  %v610_v3 = vpop.f32.mrb[48].mxu0 }
 0x1f1   : > { %v611_v4 = vadd.f32 %v610_v3, %v2180_v25  ;;  %v612_v7 = vpop.f32.mrb[49].mxu0 }
 0x1f2   : > { %v613_v8 = vadd.f32 %v612_v7, %v2182_v26  ;;  %v614_v11 = vpop.f32.mrb[50].mxu0  ;;  %1000 = vmatprep.mubr.bf16.mxu1 %v736_v2 }
 0x1f3   : > { %v615_v14 = vadd.f32 %v614_v11, %v2180_v25  ;;  %v616_v17 = vpop.f32.mrb[51].mxu0  ;;  %1001 = vmatmul.mubr.bf16.gmra.mrb[44].mxu1 %v735_v1  ;;  %v697_v19 = vmax.f32 %v611_v4, 0.0 }
 0x1f4   : > { %v617_v18 = vadd.f32 %v616_v17, %v2182_v26  ;;  %v698_v23 = vmax.f32 %v613_v8, 0.0 }
 0x1f5   : > { %v699_v22 = vmax.f32 %v615_v14, 0.0 }
 0x1f6   : > { %v700_v24 = vmax.f32 %v617_v18, 0.0 }
 0x1f7   : > { %v737_v29 = vpack.c.bf16 %v699_v22, %v697_v19 }
 0x1f8   : > { %v738_v0 = vpack.c.bf16 %v700_v24, %v698_v23  ;;  %v620_v30 = vpop.f32.mrb[52].mxu0 }
 0x1f9   : > { %v621_v31 = vadd.f32 %v620_v30, %v2180_v25  ;;  %v622_v32 = vpop.f32.mrb[53].mxu0 }
 0x1fa   : > { %v623_v33 = vadd.f32 %v622_v32, %v2182_v26  ;;  %v624_v36 = vpop.f32.mrb[54].mxu0  ;;  %1008 = vmatprep.mubr.bf16.mxu1 %v738_v0 }
 0x1fb   : > { %v625_v39 = vadd.f32 %v624_v36, %v2180_v25  ;;  %v626_v42 = vpop.f32.mrb[55].mxu0  ;;  %1009 = vmatmul.mubr.bf16.gmra.mrb[48].mxu1 %v737_v29  ;;  %v701_v48 = vmax.f32 %v621_v31, 0.0 }
 0x1fc   : > { %v627_v45 = vadd.f32 %v626_v42, %v2182_v26  ;;  %v702_v54 = vmax.f32 %v623_v33, 0.0 }
 0x1fd   : > { %v703_v51 = vmax.f32 %v625_v39, 0.0 }
 0x1fe   : > { %v704_v57 = vmax.f32 %v627_v45, 0.0 }
 0x1ff   : > { %v739_v60 = vpack.c.bf16 %v703_v51, %v701_v48 }
 0x200   : > { %v740_v63 = vpack.c.bf16 %v704_v57, %v702_v54  ;;  %v630_v1 = vpop.f32.mrb[56].mxu0 }
 0x201   : > { %v631_v2 = vadd.f32 %v630_v1, %v2180_v25  ;;  %v632_v3 = vpop.f32.mrb[57].mxu0 }
 0x202   : > { %v633_v4 = vadd.f32 %v632_v3, %v2182_v26  ;;  %v634_v7 = vpop.f32.mrb[58].mxu0  ;;  %1016 = vmatprep.mubr.bf16.mxu1 %v740_v63  ;;  %v2248_v63 = vld [vmem:[#allocation10] ss:$0 sm:$0xff] }
 0x203   : > { %v635_v8 = vadd.f32 %v634_v7, %v2180_v25  ;;  %v636_v11 = vpop.f32.mrb[59].mxu0  ;;  %1017 = vmatmul.mubr.bf16.gmra.mrb[52].mxu1 %v739_v60  ;;  %v705_v17 = vmax.f32 %v631_v2, 0.0 }
 0x204   : > { %v637_v14 = vadd.f32 %v636_v11, %v2182_v26  ;;  %v706_v19 = vmax.f32 %v633_v4, 0.0 }
 0x205   : > { %v707_v18 = vmax.f32 %v635_v8, 0.0 }
 0x206   : > { %v708_v22 = vmax.f32 %v637_v14, 0.0 }
 0x207   : > { %v741_v23 = vpack.c.bf16 %v707_v18, %v705_v17 }
 0x208   : > { %v742_v24 = vpack.c.bf16 %v708_v22, %v706_v19  ;;  %v640_v29 = vpop.f32.mrb[60].mxu0 }
 0x209   : > { %v641_v0 = vadd.f32 %v640_v29, %v2180_v25  ;;  %v642_v30 = vpop.f32.mrb[61].mxu0 }
 0x20a   : > { %v643_v31 = vadd.f32 %v642_v30, %v2182_v26  ;;  %v644_v32 = vpop.f32.mrb[62].mxu0  ;;  %1024 = vmatprep.mubr.bf16.mxu1 %v742_v24 }
 0x20b   : > { %v645_v33 = vadd.f32 %v644_v32, %v2180_v25  ;;  %v646_v36 = vpop.f32.mrb[63].mxu0  ;;  %1025 = vmatmul.mubr.bf16.gmra.mrb[56].mxu1 %v741_v23  ;;  %v709_v42 = vmax.f32 %v641_v0, 0.0 }
 0x20c   : > { %v647_v39 = vadd.f32 %v646_v36, %v2182_v26  ;;  %v710_v48 = vmax.f32 %v643_v31, 0.0 }
 0x20d   : > { %v711_v45 = vmax.f32 %v645_v33, 0.0 }
 0x20e   : > { %v712_v51 = vmax.f32 %v647_v39, 0.0 }
 0x20f   : > { %v743_v54 = vpack.c.bf16 %v711_v45, %v709_v42 }
 0x210   : > { %v744_v57 = vpack.c.bf16 %v712_v51, %v710_v48 }
 0x212   : > { %1032 = vmatprep.mubr.bf16.mxu1 %v744_v57 }
 0x213   : > { %1033 = vmatmul.mubr.bf16.gmra.mrb[60].mxu1 %v743_v54 }
 0x26e   : > { %v1303_v60 = vpop.f32.mrb[0].mxu1 }
 0x26f   : > { %v1304_v1 = vpop.f32.mrb[1].mxu1 }
 0x270   : > { %v1305_v2 = vadd.f32 %v1304_v1, %v1303_v60  ;;  %v1306_v3 = vpop.f32.mrb[2].mxu1 }
 0x271   : > { %v1307_v25 = vpop.f32.mrb[3].mxu1 }
 0x272   : > { %v915_v4 = vadd.f32 %v1305_v2, %v2248_v63  ;;  %v1308_v7 = vadd.f32 %v1307_v25, %v1306_v3 }
 0x274   : > { %v1041_v26 = vadd.f32 %v915_v4, %v2038_v20  ;;  %v918_v8 = vadd.f32 %v1308_v7, %v2248_v63 }
 0x276   : > { %1073 = vst [vmem:[%s2255_s24] sm:$0xff] %v1041_v26  ;;  %v1042_v11 = vadd.f32 %v918_v8, %v2041_v21  ;;  %v1309_v14 = vpop.f32.mrb[4].mxu1 }
 0x277   : > { %v1310_v17 = vpop.f32.mrb[5].mxu1 }
 0x278   : > { %1074 = vst [vmem:[%s2255_s24 + $0x8] sm:$0xff] %v1042_v11  ;;  %v1311_v18 = vadd.f32 %v1310_v17, %v1309_v14  ;;  %v1312_v19 = vpop.f32.mrb[6].mxu1 }
 0x279   : > { %v1313_v22 = vpop.f32.mrb[7].mxu1 }
 0x27a   : > { %v923_v20 = vadd.f32 %v1311_v18, %v2248_v63  ;;  %v1314_v23 = vadd.f32 %v1313_v22, %v1312_v19 }
 0x27c   : > { %v1043_v24 = vadd.f32 %v923_v20, %v2046_v27  ;;  %v926_v29 = vadd.f32 %v1314_v23, %v2248_v63 }
 0x27e   : > { %1075 = vst [vmem:[%s2255_s24 + $0x10] sm:$0xff] %v1043_v24  ;;  %v1044_v0 = vadd.f32 %v926_v29, %v2049_v28  ;;  %v1315_v30 = vpop.f32.mrb[8].mxu1 }
 0x27f   : > { %v1316_v21 = vpop.f32.mrb[9].mxu1 }
 0x280   : > { %1076 = vst [vmem:[%s2255_s24 + $0x18] sm:$0xff] %v1044_v0  ;;  %v1317_v31 = vadd.f32 %v1316_v21, %v1315_v30  ;;  %v1318_v32 = vpop.f32.mrb[10].mxu1 }
 0x281   : > { %v1319_v33 = vpop.f32.mrb[11].mxu1 }
 0x282   : > { %v931_v36 = vadd.f32 %v1317_v31, %v2248_v63  ;;  %v1320_v39 = vadd.f32 %v1319_v33, %v1318_v32 }
 0x284   : > { %v1045_v42 = vadd.f32 %v931_v36, %v2056_v34  ;;  %v934_v27 = vadd.f32 %v1320_v39, %v2248_v63 }
 0x286   : > { %1077 = vst [vmem:[%s2255_s24 + $0x20] sm:$0xff] %v1045_v42  ;;  %v1046_v45 = vadd.f32 %v934_v27, %v2059_v35  ;;  %v1321_v48 = vpop.f32.mrb[12].mxu1 }
 0x287   : > { %v1322_v28 = vpop.f32.mrb[13].mxu1 }
 0x288   : > { %1078 = vst [vmem:[%s2255_s24 + $0x28] sm:$0xff] %v1046_v45  ;;  %v1323_v51 = vadd.f32 %v1322_v28, %v1321_v48  ;;  %v1324_v54 = vpop.f32.mrb[14].mxu1 }
 0x289   : > { %v1325_v57 = vpop.f32.mrb[15].mxu1 }
 0x28a   : > { %v939_v60 = vadd.f32 %v1323_v51, %v2248_v63  ;;  %v1326_v1 = vadd.f32 %v1325_v57, %v1324_v54 }
 0x28c   : > { %v1047_v2 = vadd.f32 %v939_v60, %v2065_v37  ;;  %v942_v34 = vadd.f32 %v1326_v1, %v2248_v63 }
 0x28e   : > { %1079 = vst [vmem:[%s2255_s24 + $0x30] sm:$0xff] %v1047_v2  ;;  %v1048_v3 = vadd.f32 %v942_v34, %v2068_v38  ;;  %v1327_v25 = vpop.f32.mrb[16].mxu1 }
 0x28f   : > { %v1328_v35 = vpop.f32.mrb[17].mxu1 }
 0x290   : > { %1080 = vst [vmem:[%s2255_s24 + $0x38] sm:$0xff] %v1048_v3  ;;  %v1329_v4 = vadd.f32 %v1328_v35, %v1327_v25  ;;  %v1330_v7 = vpop.f32.mrb[18].mxu1 }
 0x291   : > { %v1331_v26 = vpop.f32.mrb[19].mxu1 }
 0x292   : > { %v947_v8 = vadd.f32 %v1329_v4, %v2248_v63  ;;  %v1332_v11 = vadd.f32 %v1331_v26, %v1330_v7 }
 0x294   : > { %v1049_v14 = vadd.f32 %v947_v8, %v2074_v40  ;;  %v950_v37 = vadd.f32 %v1332_v11, %v2248_v63 }
 0x296   : > { %1081 = vst [vmem:[%s2255_s24 + $0x40] sm:$0xff] %v1049_v14  ;;  %v1050_v17 = vadd.f32 %v950_v37, %v2077_v41  ;;  %v1333_v18 = vpop.f32.mrb[20].mxu1 }
 0x297   : > { %v1334_v38 = vpop.f32.mrb[21].mxu1 }
 0x298   : > { %1082 = vst [vmem:[%s2255_s24 + $0x48] sm:$0xff] %v1050_v17  ;;  %v1335_v19 = vadd.f32 %v1334_v38, %v1333_v18  ;;  %v1336_v22 = vpop.f32.mrb[22].mxu1 }
 0x299   : > { %v1337_v20 = vpop.f32.mrb[23].mxu1 }
 0x29a   : > { %v955_v23 = vadd.f32 %v1335_v19, %v2248_v63  ;;  %v1338_v24 = vadd.f32 %v1337_v20, %v1336_v22 }
 0x29c   : > { %v1051_v29 = vadd.f32 %v955_v23, %v2083_v43  ;;  %v958_v40 = vadd.f32 %v1338_v24, %v2248_v63 }
 0x29e   : > { %1083 = vst [vmem:[%s2255_s24 + $0x50] sm:$0xff] %v1051_v29  ;;  %v1052_v0 = vadd.f32 %v958_v40, %v2086_v44  ;;  %v1339_v30 = vpop.f32.mrb[24].mxu1 }
 0x29f   : > { %v1340_v41 = vpop.f32.mrb[25].mxu1 }
 0x2a0   : > { %1084 = vst [vmem:[%s2255_s24 + $0x58] sm:$0xff] %v1052_v0  ;;  %v1341_v21 = vadd.f32 %v1340_v41, %v1339_v30  ;;  %v1342_v31 = vpop.f32.mrb[26].mxu1 }
 0x2a1   : > { %v1343_v32 = vpop.f32.mrb[27].mxu1 }
 0x2a2   : > { %v963_v33 = vadd.f32 %v1341_v21, %v2248_v63  ;;  %v1344_v36 = vadd.f32 %v1343_v32, %v1342_v31 }
 0x2a4   : > { %v1053_v39 = vadd.f32 %v963_v33, %v2092_v46  ;;  %v966_v43 = vadd.f32 %v1344_v36, %v2248_v63 }
 0x2a6   : > { %1085 = vst [vmem:[%s2255_s24 + $0x60] sm:$0xff] %v1053_v39  ;;  %v1054_v42 = vadd.f32 %v966_v43, %v2095_v47  ;;  %v1345_v27 = vpop.f32.mrb[28].mxu1 }
 0x2a7   : > { %v1346_v44 = vpop.f32.mrb[29].mxu1 }
 0x2a8   : > { %1086 = vst [vmem:[%s2255_s24 + $0x68] sm:$0xff] %v1054_v42  ;;  %v1347_v45 = vadd.f32 %v1346_v44, %v1345_v27  ;;  %v1348_v48 = vpop.f32.mrb[30].mxu1 }
 0x2a9   : > { %v1349_v28 = vpop.f32.mrb[31].mxu1 }
 0x2aa   : > { %v971_v51 = vadd.f32 %v1347_v45, %v2248_v63  ;;  %v1350_v54 = vadd.f32 %v1349_v28, %v1348_v48 }
 0x2ac   : > { %v1055_v57 = vadd.f32 %v971_v51, %v2101_v49  ;;  %v974_v46 = vadd.f32 %v1350_v54, %v2248_v63 }
 0x2ae   : > { %1087 = vst [vmem:[%s2255_s24 + $0x70] sm:$0xff] %v1055_v57  ;;  %v1056_v60 = vadd.f32 %v974_v46, %v2104_v50  ;;  %v1351_v1 = vpop.f32.mrb[32].mxu1 }
 0x2af   : > { %v1352_v47 = vpop.f32.mrb[33].mxu1 }
 0x2b0   : > { %1088 = vst [vmem:[%s2255_s24 + $0x78] sm:$0xff] %v1056_v60  ;;  %v1353_v2 = vadd.f32 %v1352_v47, %v1351_v1  ;;  %v1354_v34 = vpop.f32.mrb[34].mxu1 }
 0x2b1   : > { %v1355_v3 = vpop.f32.mrb[35].mxu1 }
 0x2b2   : > { %v979_v25 = vadd.f32 %v1353_v2, %v2248_v63  ;;  %v1356_v35 = vadd.f32 %v1355_v3, %v1354_v34 }
 0x2b4   : > { %v1057_v4 = vadd.f32 %v979_v25, %v2110_v52  ;;  %v982_v49 = vadd.f32 %v1356_v35, %v2248_v63 }
 0x2b6   : > { %1089 = vst [vmem:[%s2255_s24 + $0x80] sm:$0xff] %v1057_v4  ;;  %v1058_v7 = vadd.f32 %v982_v49, %v2113_v53  ;;  %v1357_v26 = vpop.f32.mrb[36].mxu1 }
 0x2b7   : > { %v1358_v50 = vpop.f32.mrb[37].mxu1 }
 0x2b8   : > { %1090 = vst [vmem:[%s2255_s24 + $0x88] sm:$0xff] %v1058_v7  ;;  %v1359_v8 = vadd.f32 %v1358_v50, %v1357_v26  ;;  %v1360_v11 = vpop.f32.mrb[38].mxu1 }
 0x2b9   : > { %v1361_v14 = vpop.f32.mrb[39].mxu1 }
 0x2ba   : > { %v987_v37 = vadd.f32 %v1359_v8, %v2248_v63  ;;  %v1362_v17 = vadd.f32 %v1361_v14, %v1360_v11 }
 0x2bc   : > { %v1059_v18 = vadd.f32 %v987_v37, %v2119_v55  ;;  %v990_v52 = vadd.f32 %v1362_v17, %v2248_v63 }
 0x2be   : > { %1091 = vst [vmem:[%s2255_s24 + $0x90] sm:$0xff] %v1059_v18  ;;  %v1060_v38 = vadd.f32 %v990_v52, %v2122_v56  ;;  %v1363_v19 = vpop.f32.mrb[40].mxu1 }
 0x2bf   : > { %v1364_v53 = vpop.f32.mrb[41].mxu1 }
 0x2c0   : > { %1092 = vst [vmem:[%s2255_s24 + $0x98] sm:$0xff] %v1060_v38  ;;  %v1365_v22 = vadd.f32 %v1364_v53, %v1363_v19  ;;  %v1366_v20 = vpop.f32.mrb[42].mxu1 }
 0x2c1   : > { %v1367_v23 = vpop.f32.mrb[43].mxu1 }
 0x2c2   : > { %v995_v24 = vadd.f32 %v1365_v22, %v2248_v63  ;;  %v1368_v29 = vadd.f32 %v1367_v23, %v1366_v20 }
 0x2c4   : > { %v1061_v40 = vadd.f32 %v995_v24, %v2128_v58  ;;  %v998_v55 = vadd.f32 %v1368_v29, %v2248_v63 }
 0x2c6   : > { %1093 = vst [vmem:[%s2255_s24 + $0xa0] sm:$0xff] %v1061_v40  ;;  %v1062_v0 = vadd.f32 %v998_v55, %v2131_v59  ;;  %v1369_v30 = vpop.f32.mrb[44].mxu1 }
 0x2c7   : > { %v1370_v56 = vpop.f32.mrb[45].mxu1 }
 0x2c8   : > { %1094 = vst [vmem:[%s2255_s24 + $0xa8] sm:$0xff] %v1062_v0  ;;  %v1371_v41 = vadd.f32 %v1370_v56, %v1369_v30  ;;  %v1372_v21 = vpop.f32.mrb[46].mxu1 }
 0x2c9   : > { %v1373_v31 = vpop.f32.mrb[47].mxu1 }
 0x2ca   : > { %v1003_v32 = vadd.f32 %v1371_v41, %v2248_v63  ;;  %v1374_v33 = vadd.f32 %v1373_v31, %v1372_v21 }
 0x2cc   : > { %v1063_v36 = vadd.f32 %v1003_v32, %v2137_v61  ;;  %v1006_v58 = vadd.f32 %v1374_v33, %v2248_v63 }
 0x2ce   : > { %1095 = vst [vmem:[%s2255_s24 + $0xb0] sm:$0xff] %v1063_v36  ;;  %v1064_v39 = vadd.f32 %v1006_v58, %v2140_v62  ;;  %v1375_v43 = vpop.f32.mrb[48].mxu1 }
 0x2cf   : > { %v1376_v59 = vpop.f32.mrb[49].mxu1 }
 0x2d0   : > { %1096 = vst [vmem:[%s2255_s24 + $0xb8] sm:$0xff] %v1064_v39  ;;  %v1377_v42 = vadd.f32 %v1376_v59, %v1375_v43  ;;  %v1378_v27 = vpop.f32.mrb[50].mxu1 }
 0x2d1   : > { %v1379_v44 = vpop.f32.mrb[51].mxu1 }
 0x2d2   : > { %v1011_v45 = vadd.f32 %v1377_v42, %v2248_v63  ;;  %v1380_v48 = vadd.f32 %v1379_v44, %v1378_v27 }
 0x2d4   : > { %v1065_v28 = vadd.f32 %v1011_v45, %v2146_v5  ;;  %v1014_v61 = vadd.f32 %v1380_v48, %v2248_v63 }
 0x2d6   : > { %1097 = vst [vmem:[%s2255_s24 + $0xc0] sm:$0xff] %v1065_v28  ;;  %v1066_v51 = vadd.f32 %v1014_v61, %v2149_v6  ;;  %v1381_v54 = vpop.f32.mrb[52].mxu1 }
 0x2d7   : > { %v1382_v62 = vpop.f32.mrb[53].mxu1 }
 0x2d8   : > { %1098 = vst [vmem:[%s2255_s24 + $0xc8] sm:$0xff] %v1066_v51  ;;  %v1383_v57 = vadd.f32 %v1382_v62, %v1381_v54  ;;  %v1384_v46 = vpop.f32.mrb[54].mxu1 }
 0x2d9   : > { %v1385_v60 = vpop.f32.mrb[55].mxu1 }
 0x2da   : > { %v1019_v1 = vadd.f32 %v1383_v57, %v2248_v63  ;;  %v1386_v47 = vadd.f32 %v1385_v60, %v1384_v46 }
 0x2dc   : > { %v1067_v2 = vadd.f32 %v1019_v1, %v2155_v9  ;;  %v1022_v5 = vadd.f32 %v1386_v47, %v2248_v63 }
 0x2de   : > { %1099 = vst [vmem:[%s2255_s24 + $0xd0] sm:$0xff] %v1067_v2  ;;  %v1068_v34 = vadd.f32 %v1022_v5, %v2158_v10  ;;  %v1387_v3 = vpop.f32.mrb[56].mxu1 }
 0x2df   : > { %v1388_v6 = vpop.f32.mrb[57].mxu1 }
 0x2e0   : > { %1100 = vst [vmem:[%s2255_s24 + $0xd8] sm:$0xff] %v1068_v34  ;;  %v1389_v25 = vadd.f32 %v1388_v6, %v1387_v3  ;;  %v1390_v35 = vpop.f32.mrb[58].mxu1 }
 0x2e1   : > { %v1391_v4 = vpop.f32.mrb[59].mxu1 }
 0x2e2   : > { %v1027_v49 = vadd.f32 %v1389_v25, %v2248_v63  ;;  %v1392_v7 = vadd.f32 %v1391_v4, %v1390_v35 }
 0x2e4   : > { %v1069_v26 = vadd.f32 %v1027_v49, %v2164_v12  ;;  %v1030_v9 = vadd.f32 %v1392_v7, %v2248_v63 }
 0x2e6   : > { %1101 = vst [vmem:[%s2255_s24 + $0xe0] sm:$0xff] %v1069_v26  ;;  %v1070_v50 = vadd.f32 %v1030_v9, %v2167_v13  ;;  %v1393_v10 = vpop.f32.mrb[60].mxu1 }
 0x2e7   : > { %v1394_v8 = vpop.f32.mrb[61].mxu1 }
 0x2e8   : > { %1102 = vst [vmem:[%s2255_s24 + $0xe8] sm:$0xff] %v1070_v50  ;;  %v1395_v11 = vadd.f32 %v1394_v8, %v1393_v10  ;;  %v1396_v14 = vpop.f32.mrb[62].mxu1 }
 0x2e9   : > { %v1397_v37 = vpop.f32.mrb[63].mxu1 }
 0x2ea   : > { %v1035_v17 = vadd.f32 %v1395_v11, %v2248_v63  ;;  %v1398_v18 = vadd.f32 %v1397_v37, %v1396_v14 }
 0x2ec   : > { %v1071_v12 = vadd.f32 %v1035_v17, %v2173_v15  ;;  %v1038_v52 = vadd.f32 %v1398_v18, %v2248_v63 }
 0x2ee   : > { %1103 = vst [vmem:[%s2255_s24 + $0xf0] sm:$0xff] %v1071_v12  ;;  %v1072_v13 = vadd.f32 %v1038_v52, %v2176_v16 }
 0x2f0   : > { %1104 = vst [vmem:[%s2255_s24 + $0xf8] sm:$0xff] %v1072_v13 }
 0x2f1   : > { %1688 = shalt.err (!%p1685_p13)
}
 0x2f2   : > { %s1689_s29 = scalar_lea.hbm %s2352_s6, 4096  ;;  %s1693_s9 = scalar_lea.hbm %s2406_s5, 8192 }
 0x2f3   : > { %p1690_p9 = scmp.ne.s32.totalorder %s2352_s6, %s1689_s29  ;;  %p1694_p6 = scmp.lt.u32.totalorder %s2352_s6, %s2406_s5 }
 0x2f4   : > { %p1695_p10 = scmp.lt.u32.totalorder %s1693_s9, %s1689_s29  ;;  %p1697_p4 = scmp.lt.u32.totalorder %s1689_s29, %s2352_s6 }
 0x2f5   : > { %p1691_p0 = pnand %p1690_p9, %p1964_p8 }
 0x2f6   : > { %p1696_p3 = por %p1695_p10, %p1694_p6 }
 0x2f7   : > { %p1692_p11 = pneg %p1691_p0 }
 0x2f8   : > { %p1698_p5 = por %p1697_p4, %p1696_p3 }
 0x2fa   : > { %p1699_p7 = pnand %p1698_p5, %p1692_p11 }
 0x2fc   : > { %1702 = shalt.err (!%p1699_p7)
}
 0x2fd   : > { %s1762_s26 = smov 128   ;;  %s1763_s13 = smov 8  }
 0x2fe   : > { %1417 = dma.vmem_to_hbm [thread:$0]  (%p1964_p8), %s2354_s17, 4096, %s2352_s6, %s1106_s22, %s1762_s26, %s1762_s26, %s1763_s13  }
 0x2ff PF: > { %s1134_s7 = sand.u32 1, %s1737_s18   ;;  %p2426_p12 = scmp.ne.s32.totalorder %s2412_s25, 0 }
 0x300   : > { %p2427_p1 = scmp.ge.s32.totalorder %s1749_s21, 2  ;;  %s1135_s10 = scalar_lea.sflag [#allocation4], %s1134_s7 }
 0x302   : > { %p1437_p2 = pnand %p2427_p1, %p2426_p12 }
 0x304   : > { %1732 = dma.done.wait (!%p1437_p2), %s1135_s10, 4096  }
 0x305   : > { %1734 = vsyncadd (!%p1437_p2), %s1135_s10, 4294963200  ;;  %p20_p13 = scmp.ge.s32.totalorder %s1951_s12, 4   ;;  %s2428_s18 = smov %s1741_s19 }
 0x306   : > { %s2429_s19 = smov %s1745_s20  ;;  %s2430_s20 = smov %s1960_s15 }
 0x307   : > { %s2431_s21 = smov %s1951_s12  ;;  %22 = sbr.rel (!%p20_p13) target bundleno = 7 (0x7), region = 101 }
 0x30e   :  { %1140 = vsyncpa [#allocation3], 1 }
 0x30f   :  { %1142 = vsyncpa [#allocation3 + $0x1], 1 }
 0x310   :  { %1143 = vsyncpa [#allocation6], 1 }
 0x311   :  { %1144 = vsyncpa [#allocation9], 1 }
 0x312   :  { %1145 = vsyncpa [#allocation4], 1 }
 0x313   :  { %1147 = vsyncpa [#allocation4 + $0x1], 1 }

</bundles_post_ra>
